<compile_context>
chip_gen: v7x
topology: tpu7x:2x2x1
jax: 0.10.0
libtpu: 0.0.40
codegen_flags: <defaults>
</compile_context>

<pallas_src>
import functools

import jax
import jax.numpy as jnp
from jax import lax
from jax.experimental import pallas as pl
from jax.experimental.pallas import tpu as pltpu

EPS = 1e-5  # nn.LayerNorm default


# ---------------------------------------------------------------------------
# In-kernel helpers
# ---------------------------------------------------------------------------
def _layernorm(x, w, b):
    """LayerNorm over last dim. x: (R, D), w/b: (1, D). f32 math."""
    mu = jnp.mean(x, axis=-1, keepdims=True)
    xc = x - mu
    var = jnp.mean(xc * xc, axis=-1, keepdims=True)
    inv = jax.lax.rsqrt(var + EPS)
    return xc * inv * w + b


def _mm(a, b):
    """bf16 x bf16 matmul with f32 accumulation (MXU-native on v6e/v7x)."""
    return jnp.dot(a.astype(jnp.bfloat16), b.astype(jnp.bfloat16),
                   preferred_element_type=jnp.float32)


# ---------------------------------------------------------------------------
# Fused forward kernel: grid axis = encoder layer index
# ---------------------------------------------------------------------------
def fused_encoder_kernel(x_ref, inw_ref, inbp_ref, hm_ref, bias_ref, sel_ref,
                         ln1w_ref, ln1b_ref, wq_ref, bq_ref, wk_ref, bk_ref,
                         wv_ref, bv_ref, wo_ref, bo_ref, ln2w_ref, ln2b_ref,
                         w1_ref, b1_ref, w2_ref, b2_ref,
                         fnw_ref, fnb_ref, outw_ref, outb_ref,
                         o_ref, h_sc, *, nhead):
    l = pl.program_id(0)

    # ---- layer 0 prologue: input projection + (bias + pos, pre-folded) ------
    @pl.when(l == 0)
    def _():
        h_sc[...] = _mm(x_ref[...], inw_ref[...]) + inbp_ref[...]

    x = h_sc[...]                                   # (R, D) f32, R = B*S
    R, D = x.shape

    hm = hm_ref[...]                                # (C, D) bf16 head indicator

    # ---- self-attention block: x = x + MHA(LN1(x)) ---------------------------
    n1 = _layernorm(x, ln1w_ref[0], ln1b_ref[0]).astype(jnp.bfloat16)
    # attention scale is folded into wq/bq at pack time
    q = (_mm(n1, wq_ref[0]) + bq_ref[0]).astype(jnp.bfloat16)     # (R, D)
    k = (_mm(n1, wk_ref[0]) + bk_ref[0]).astype(jnp.bfloat16)
    v = (_mm(n1, wv_ref[0]) + bv_ref[0]).astype(jnp.bfloat16)

    # Sublane-replicate across heads then mask with the (layer-invariant) head
    # indicator: km[h*R + r, d] = k[r, d] iff d belongs to head h (same for v).
    k_rep = jnp.concatenate([k] * nhead, axis=0)                  # (C, D) bf16
    v_rep = jnp.concatenate([v] * nhead, axis=0)
    km = k_rep * hm
    vm = v_rep * hm

    # scores for every (query-row, head, key-row): contraction on the shared D
    # axis (MXU consumes the transposed RHS natively -> no XLU transpose).
    s = lax.dot_general(q, km, dimension_numbers=(((1,), (1,)), ((), ())),
                        preferred_element_type=jnp.float32)       # (R, C) f32
    s = s + bias_ref[...]              # cross-batch additive mask (0 / -1e30)
    s = s - jnp.max(s, axis=-1, keepdims=True)                    # f32
    p = jnp.exp(s)                     # masked entries -> 0

    # Fused context + softmax-denominator matmul: RHS = [vm | head_indicator].
    rhs = jnp.concatenate([vm, hm], axis=1)                       # (C, 2D) bf16
    cd = _mm(p, rhs)                                              # (R, 2D) f32
    ctx = cd[:, :D] * pl.reciprocal(cd[:, D:], approx=False)      # (R, D)
    x = x + _mm(ctx, wo_ref[0]) + bo_ref[0]        # dropout == identity (eval)

    # ---- feed-forward block: x = x + W2 relu(W1 LN2(x)) ----------------------
    n2 = _layernorm(x, ln2w_ref[0], ln2b_ref[0])
    f = jnp.maximum(_mm(n2, w1_ref[0]) + b1_ref[0], 0.0)
    x = x + _mm(f, w2_ref[0]) + b2_ref[0]

    h_sc[...] = x

    # ---- last layer epilogue: final norm, last token, output projection ------
    @pl.when(l == pl.num_programs(0) - 1)
    def _():
        # select row b*S + (S-1) per batch via a tiny pre-built 0/1 matmul
        # (avoids strided sublane gathers); keep f32 for exact row selection.
        last = jnp.dot(sel_ref[...], x, preferred_element_type=jnp.float32)
        last = _layernorm(last, fnw_ref[...], fnb_ref[...])
        o_ref[...] = _mm(last, outw_ref[...]) + outb_ref[...]


# ---------------------------------------------------------------------------
# Wrapper: host-side mask precomputation + pallas_call plumbing
# ---------------------------------------------------------------------------
def transformer_encoder_forward(x, p, nhead):
    """x: (B, S, input_dim) f32; p: packed/pre-transposed params."""
    B, S, Din = x.shape
    D = p["in_w_t"].shape[1]
    FF = p["w1_t"].shape[2]
    L = p["wq_t"].shape[0]
    R = B * S
    C = nhead * R
    hd = D // nhead
    assert D % nhead == 0
    x2d = x.reshape(R, Din)

    # ---- layer-invariant masks/selectors, hoisted out of the kernel body ----
    c_head = (jnp.arange(C, dtype=jnp.int32) // R)[:, None]       # (C, 1)
    d_head = (jnp.arange(D, dtype=jnp.int32) // hd)[None, :]      # (1, D)
    head_mask = (c_head == d_head).astype(jnp.bfloat16)           # (C, D)

    row_b = (jnp.arange(R, dtype=jnp.int32) // S)[:, None]        # (R, 1)
    col_b = ((jnp.arange(C, dtype=jnp.int32) % R) // S)[None, :]  # (1, C)
    attn_bias = jnp.where(row_b == col_b, 0.0, -1e30).astype(jnp.float32)

    last_sel = (jnp.arange(R, dtype=jnp.int32)[None, :] ==
                (jnp.arange(B, dtype=jnp.int32) * S + S - 1)[:, None]
                ).astype(jnp.float32)                             # (B, R)

    args = (x2d, p["in_w_t"], p["in_bias_pos"], head_mask, attn_bias, last_sel,
            p["ln1_w"], p["ln1_b"], p["wq_t"], p["bq"], p["wk_t"], p["bk"],
            p["wv_t"], p["bv"], p["wo_t"], p["bo"], p["ln2_w"], p["ln2_b"],
            p["w1_t"], p["b1"], p["w2_t"], p["b2"],
            p["fn_w"], p["fn_b"], p["out_w_t"], p["out_b"])

    stacked = lambda a: pl.BlockSpec((1,) + a.shape[1:], lambda l: (l, 0, 0))
    fixed = lambda a: pl.BlockSpec(a.shape, lambda l: (0, 0))

    in_specs = [fixed(x2d), fixed(p["in_w_t"]), fixed(p["in_bias_pos"]),
                fixed(head_mask), fixed(attn_bias), fixed(last_sel)]
    in_specs += [stacked(p[k]) for k in
                 ("ln1_w", "ln1_b", "wq_t", "bq", "wk_t", "bk", "wv_t", "bv",
                  "wo_t", "bo", "ln2_w", "ln2_b", "w1_t", "b1", "w2_t", "b2")]
    in_specs += [fixed(p["fn_w"]), fixed(p["fn_b"]),
                 fixed(p["out_w_t"]), fixed(p["out_b"])]

    # advisory cost estimate for XLA's scheduler
    flops_layer = (2 * R * D * 3 * D          # q/k/v projections
                   + 2 * R * C * D            # scores
                   + 2 * R * C * 2 * D        # fused ctx + denom
                   + 2 * R * D * D            # attention out proj
                   + 4 * R * D * FF)          # feed-forward
    flops = L * flops_layer + 2 * R * Din * D + 2 * B * R * D + 2 * B * D * D
    transcendentals = L * (R * C + 2 * R) + B
    bytes_accessed = (sum(int(a.size) * a.dtype.itemsize for a in args)
                      + B * D * 4)

    kernel = functools.partial(fused_encoder_kernel, nhead=nhead)
    return pl.pallas_call(
        kernel,
        out_shape=jax.ShapeDtypeStruct((B, D), jnp.float32),
        grid=(L,),
        in_specs=in_specs,
        out_specs=pl.BlockSpec((B, D), lambda l: (0, 0)),
        scratch_shapes=[pltpu.VMEM((R, D), jnp.float32)],
        compiler_params=pltpu.CompilerParams(
            dimension_semantics=("arbitrary",)),
        cost_estimate=pl.CostEstimate(
            flops=int(flops),
            transcendentals=int(transcendentals),
            bytes_accessed=int(bytes_accessed)),
    )(*args)


# ---------------------------------------------------------------------------
# Parameter construction (PyTorch (out, in) convention) + host-side packing
# ---------------------------------------------------------------------------
def make_params(key, input_dim, d_model, nhead, num_layers, dim_ff):
    def nrm(k, shape, std=0.02):
        return (std * jax.random.normal(k, shape)).astype(jnp.float32)

    keys = iter(jax.random.split(key, 8 + 16 * num_layers))
    p = {
        "in_w": nrm(next(keys), (d_model, input_dim)),
        "in_b": nrm(next(keys), (1, d_model)),
        "pos": nrm(next(keys), (1, d_model)),
        "out_w": nrm(next(keys), (d_model, d_model)),
        "out_b": nrm(next(keys), (1, d_model)),
        "fn_w": jnp.ones((1, d_model), jnp.float32),
        "fn_b": jnp.zeros((1, d_model), jnp.float32),
        "layers": [],
    }
    for _ in range(num_layers):
        p["layers"].append({
            "ln1_w": jnp.ones((1, d_model), jnp.float32),
            "ln1_b": jnp.zeros((1, d_model), jnp.float32),
            "wqkv": nrm(next(keys), (3 * d_model, d_model)),
            "bqkv": nrm(next(keys), (1, 3 * d_model)),
            "wo": nrm(next(keys), (d_model, d_model)),
            "bo": nrm(next(keys), (1, d_model)),
            "ln2_w": jnp.ones((1, d_model), jnp.float32),
            "ln2_b": jnp.zeros((1, d_model), jnp.float32),
            "w1": nrm(next(keys), (dim_ff, d_model)),
            "b1": nrm(next(keys), (1, dim_ff)),
            "w2": nrm(next(keys), (d_model, dim_ff)),
            "b2": nrm(next(keys), (1, d_model)),
        })
    return p


def pack_params(p, nhead):
    """Pre-transpose matmul weights to (in, out), pre-cast them to bf16, split
    the fused qkv projection into lane-aligned q/k/v, fold the attention scale
    into q, fold input bias + positional encoding, and stack per-layer tensors
    along a leading L axis for the fused kernel."""
    bf = jnp.bfloat16
    D = p["in_w"].shape[0]
    hd = D // nhead
    scale = 1.0 / float(hd) ** 0.5

    stack = lambda key: jnp.stack([lp[key] for lp in p["layers"]], axis=0)
    stackT = lambda key: jnp.stack(
        [lp[key].T.astype(bf) for lp in p["layers"]], axis=0)

    wq_t = jnp.stack([(lp["wqkv"][:D] * scale).T.astype(bf)
                      for lp in p["layers"]], axis=0)
    wk_t = jnp.stack([lp["wqkv"][D:2 * D].T.astype(bf)
                      for lp in p["layers"]], axis=0)
    wv_t = jnp.stack([lp["wqkv"][2 * D:].T.astype(bf)
                      for lp in p["layers"]], axis=0)
    bq = jnp.stack([lp["bqkv"][:, :D] * scale for lp in p["layers"]], axis=0)
    bk = jnp.stack([lp["bqkv"][:, D:2 * D] for lp in p["layers"]], axis=0)
    bv = jnp.stack([lp["bqkv"][:, 2 * D:] for lp in p["layers"]], axis=0)

    return {
        "in_w_t": p["in_w"].T.astype(bf),                # (Din, D)
        "in_bias_pos": p["in_b"] + p["pos"],             # (1, D), pre-folded
        "ln1_w": stack("ln1_w"), "ln1_b": stack("ln1_b"),
        "wq_t": wq_t, "bq": bq,
        "wk_t": wk_t, "bk": bk,
        "wv_t": wv_t, "bv": bv,
        "wo_t": stackT("wo"), "bo": stack("bo"),
        "ln2_w": stack("ln2_w"), "ln2_b": stack("ln2_b"),
        "w1_t": stackT("w1"), "b1": stack("b1"),
        "w2_t": stackT("w2"), "b2": stack("b2"),
        "fn_w": p["fn_w"], "fn_b": p["fn_b"],
        "out_w_t": p["out_w"].T.astype(bf), "out_b": p["out_b"],
    }


# ---------------------------------------------------------------------------
# Pure-JAX f32 reference (mirrors the PyTorch module in eval mode)
# ---------------------------------------------------------------------------
def reference_forward(x, params, nhead):
    def ln(v, w, b):
        mu = jnp.mean(v, -1, keepdims=True)
        var = jnp.mean((v - mu) ** 2, -1, keepdims=True)
        return (v - mu) * jax.lax.rsqrt(var + EPS) * w + b

    B, S, _ = x.shape
    D = params["in_w"].shape[0]
    hd = D // nhead
    h = x @ params["in_w"].T + params["in_b"] + params["pos"]
    for lp in params["layers"]:
        n1 = ln(h, lp["ln1_w"], lp["ln1_b"])
        qkv = n1 @ lp["wqkv"].T + lp["bqkv"]
        q, k, v = jnp.split(qkv, 3, axis=-1)
        q = q.reshape(B, S, nhead, hd).transpose(0, 2, 1, 3)
        k = k.reshape(B, S, nhead, hd).transpose(0, 2, 1, 3)
        v = v.reshape(B, S, nhead, hd).transpose(0, 2, 1, 3)
        s = jnp.einsum("bhqd,bhkd->bhqk", q, k) / jnp.sqrt(float(hd))
        p_attn = jax.nn.softmax(s, axis=-1)
        o = jnp.einsum("bhqk,bhkd->bhqd", p_attn, v)
        o = o.transpose(0, 2, 1, 3).reshape(B, S, D)
        h = h + o @ lp["wo"].T + lp["bo"]
        n2 = ln(h, lp["ln2_w"], lp["ln2_b"])
        f = jax.nn.relu(n2 @ lp["w1"].T + lp["b1"]) @ lp["w2"].T + lp["b2"]
        h = h + f
    h = ln(h, params["fn_w"], params["fn_b"])        # final_norm
    return h[:, -1, :] @ params["out_w"].T + params["out_b"]


# ---------------------------------------------------------------------------
if __name__ == "__main__":
    B, S, INPUT_DIM = 2, 8, 4
    D_MODEL, NHEAD, NUM_LAYERS, DIM_FF = 32, 4, 2, 64

    key = jax.random.PRNGKey(0)
    kx, kp = jax.random.split(key)
    x = jax.random.normal(kx, (B, S, INPUT_DIM), dtype=jnp.float32)
    params = make_params(kp, INPUT_DIM, D_MODEL, NHEAD, NUM_LAYERS, DIM_FF)
    packed = pack_params(params, NHEAD)

    out = transformer_encoder_forward(x, packed, NHEAD)
    out = jax.block_until_ready(out)
    assert out.shape == (B, D_MODEL)

    ref = reference_forward(x, params, NHEAD)
    # bf16 matmul operands in the kernel vs f32 reference -> relaxed tolerance
    assert jnp.allclose(out, ref, atol=2e-2, rtol=2e-2), "mismatch vs reference"

    print("KERNEL_OK")
</pallas_src>

<mosaic_0001>
module attributes {stable_mosaic.version = 11 : i64} {
  func.func @fused_encoder_kernel(%arg0: i32, %arg1: memref<16x4xf32, #tpu.memory_space<vmem>>, %arg2: memref<4x32xbf16, #tpu.memory_space<vmem>>, %arg3: memref<1x32xf32, #tpu.memory_space<vmem>>, %arg4: memref<64x32xbf16, #tpu.memory_space<vmem>>, %arg5: memref<16x64xf32, #tpu.memory_space<vmem>>, %arg6: memref<2x16xf32, #tpu.memory_space<vmem>>, %arg7: memref<1x1x32xf32, #tpu.memory_space<vmem>>, %arg8: memref<1x1x32xf32, #tpu.memory_space<vmem>>, %arg9: memref<1x32x32xbf16, #tpu.memory_space<vmem>>, %arg10: memref<1x1x32xf32, #tpu.memory_space<vmem>>, %arg11: memref<1x32x32xbf16, #tpu.memory_space<vmem>>, %arg12: memref<1x1x32xf32, #tpu.memory_space<vmem>>, %arg13: memref<1x32x32xbf16, #tpu.memory_space<vmem>>, %arg14: memref<1x1x32xf32, #tpu.memory_space<vmem>>, %arg15: memref<1x32x32xbf16, #tpu.memory_space<vmem>>, %arg16: memref<1x1x32xf32, #tpu.memory_space<vmem>>, %arg17: memref<1x1x32xf32, #tpu.memory_space<vmem>>, %arg18: memref<1x1x32xf32, #tpu.memory_space<vmem>>, %arg19: memref<1x32x64xbf16, #tpu.memory_space<vmem>>, %arg20: memref<1x1x64xf32, #tpu.memory_space<vmem>>, %arg21: memref<1x64x32xbf16, #tpu.memory_space<vmem>>, %arg22: memref<1x1x32xf32, #tpu.memory_space<vmem>>, %arg23: memref<1x32xf32, #tpu.memory_space<vmem>>, %arg24: memref<1x32xf32, #tpu.memory_space<vmem>>, %arg25: memref<32x32xbf16, #tpu.memory_space<vmem>>, %arg26: memref<1x32xf32, #tpu.memory_space<vmem>>, %arg27: memref<2x32xf32, #tpu.memory_space<vmem>>, %arg28: memref<16x32xf32, #tpu.memory_space<vmem>>) attributes {dimension_semantics = [#tpu.dimension_semantics<arbitrary>], iteration_bounds = array<i64: 2>, scalar_prefetch = 0 : i64, scratch_operands = 1 : i64, tpu.core_type = #tpu.core_type<tc>, window_params = [{pipeline_mode = #tpu.pipeline_mode<synchronous>, transform_indices = @transform_0, window_bounds = array<i64: 16, 4>}, {pipeline_mode = #tpu.pipeline_mode<synchronous>, transform_indices = @transform_1, window_bounds = array<i64: 4, 32>}, {pipeline_mode = #tpu.pipeline_mode<synchronous>, transform_indices = @transform_2, window_bounds = array<i64: 1, 32>}, {pipeline_mode = #tpu.pipeline_mode<synchronous>, transform_indices = @transform_3, window_bounds = array<i64: 64, 32>}, {pipeline_mode = #tpu.pipeline_mode<synchronous>, transform_indices = @transform_4, window_bounds = array<i64: 16, 64>}, {pipeline_mode = #tpu.pipeline_mode<synchronous>, transform_indices = @transform_5, window_bounds = array<i64: 2, 16>}, {transform_indices = @transform_6, window_bounds = array<i64: 1, 1, 32>}, {transform_indices = @transform_7, window_bounds = array<i64: 1, 1, 32>}, {transform_indices = @transform_8, window_bounds = array<i64: 1, 32, 32>}, {transform_indices = @transform_9, window_bounds = array<i64: 1, 1, 32>}, {transform_indices = @transform_10, window_bounds = array<i64: 1, 32, 32>}, {transform_indices = @transform_11, window_bounds = array<i64: 1, 1, 32>}, {transform_indices = @transform_12, window_bounds = array<i64: 1, 32, 32>}, {transform_indices = @transform_13, window_bounds = array<i64: 1, 1, 32>}, {transform_indices = @transform_14, window_bounds = array<i64: 1, 32, 32>}, {transform_indices = @transform_15, window_bounds = array<i64: 1, 1, 32>}, {transform_indices = @transform_16, window_bounds = array<i64: 1, 1, 32>}, {transform_indices = @transform_17, window_bounds = array<i64: 1, 1, 32>}, {transform_indices = @transform_18, window_bounds = array<i64: 1, 32, 64>}, {transform_indices = @transform_19, window_bounds = array<i64: 1, 1, 64>}, {transform_indices = @transform_20, window_bounds = array<i64: 1, 64, 32>}, {transform_indices = @transform_21, window_bounds = array<i64: 1, 1, 32>}, {pipeline_mode = #tpu.pipeline_mode<synchronous>, transform_indices = @transform_22, window_bounds = array<i64: 1, 32>}, {pipeline_mode = #tpu.pipeline_mode<synchronous>, transform_indices = @transform_23, window_bounds = array<i64: 1, 32>}, {pipeline_mode = #tpu.pipeline_mode<synchronous>, transform_indices = @transform_24, window_bounds = array<i64: 32, 32>}, {pipeline_mode = #tpu.pipeline_mode<synchronous>, transform_indices = @transform_25, window_bounds = array<i64: 1, 32>}, {pipeline_mode = #tpu.pipeline_mode<synchronous>, transform_indices = @transform_26, window_bounds = array<i64: 2, 32>}]} {
    %c0_i32 = arith.constant 0 : i32
    %0 = arith.cmpi eq, %arg0, %c0_i32 : i32
    %1 = arith.extui %0 : i1 to i32
    %c0_i32_0 = arith.constant 0 : i32
    %2 = arith.cmpi ne, %1, %c0_i32_0 : i32
    scf.if %2 {
      %c0_76 = arith.constant 0 : index
      %c0_77 = arith.constant 0 : index
      %129 = vector.load %arg1[%c0_76, %c0_77] : memref<16x4xf32, #tpu.memory_space<vmem>>, vector<16x4xf32>
      %c0_78 = arith.constant 0 : index
      %c0_79 = arith.constant 0 : index
      %130 = vector.load %arg2[%c0_78, %c0_79] : memref<4x32xbf16, #tpu.memory_space<vmem>>, vector<4x32xbf16>
      %131 = arith.truncf %129 : vector<16x4xf32> to vector<16x4xbf16>
      %cst_80 = arith.constant dense<0.000000e+00> : vector<16x32xf32>
      %132 = tpu.matmul %131, %130, %cst_80 {dimension_numbers = #tpu.dot_dimension_numbers<[1], [0], [0], [1], [0, 0, 1, 1], [], []>} : vector<16x4xbf16>, vector<4x32xbf16>, vector<16x32xf32> -> vector<16x32xf32>
      %c0_81 = arith.constant 0 : index
      %c0_82 = arith.constant 0 : index
      %133 = vector.load %arg3[%c0_81, %c0_82] : memref<1x32xf32, #tpu.memory_space<vmem>>, vector<1x32xf32>
      %134 = vector.broadcast %133 : vector<1x32xf32> to vector<16x32xf32>
      %135 = arith.addf %132, %134 : vector<16x32xf32>
      %c0_83 = arith.constant 0 : index
      %c0_84 = arith.constant 0 : index
      %136 = vector.load %arg28[%c0_83, %c0_84] : memref<16x32xf32, #tpu.memory_space<vmem>>, vector<16x32xf32>
      tpu.vector_store %arg28[%c0_83, %c0_84], %135 {strides = array<i32>} : memref<16x32xf32, #tpu.memory_space<vmem>>, vector<16x32xf32>,
    } else {
    }
    %c0 = arith.constant 0 : index
    %c0_1 = arith.constant 0 : index
    %3 = vector.load %arg28[%c0, %c0_1] : memref<16x32xf32, #tpu.memory_space<vmem>>, vector<16x32xf32>
    %c0_2 = arith.constant 0 : index
    %c0_3 = arith.constant 0 : index
    %4 = vector.load %arg4[%c0_2, %c0_3] : memref<64x32xbf16, #tpu.memory_space<vmem>>, vector<64x32xbf16>
    %c0_4 = arith.constant 0 : index
    %c0_5 = arith.constant 0 : index
    %c0_6 = arith.constant 0 : index
    %5 = vector.load %arg7[%c0_4, %c0_5, %c0_6] : memref<1x1x32xf32, #tpu.memory_space<vmem>>, vector<1x1x32xf32>
    %6 = vector.shape_cast %5 : vector<1x1x32xf32> to vector<1x32xf32>
    %c0_7 = arith.constant 0 : index
    %c0_8 = arith.constant 0 : index
    %c0_9 = arith.constant 0 : index
    %7 = vector.load %arg8[%c0_7, %c0_8, %c0_9] : memref<1x1x32xf32, #tpu.memory_space<vmem>>, vector<1x1x32xf32>
    %8 = vector.shape_cast %7 : vector<1x1x32xf32> to vector<1x32xf32>
    %cst = arith.constant dense<0.000000e+00> : vector<16xf32>
    %9 = vector.multi_reduction <add>, %3, %cst [1] : vector<16x32xf32> to vector<16xf32>
    %10 = vector.shape_cast %9 : vector<16xf32> to vector<16x1xf32>
    %cst_10 = arith.constant 3.200000e+01 : f32
    %11 = vector.broadcast %cst_10 : f32 to vector<16x1xf32>
    %12 = arith.divf %10, %11 : vector<16x1xf32>
    %13 = vector.broadcast %12 : vector<16x1xf32> to vector<16x32xf32>
    %14 = arith.subf %3, %13 : vector<16x32xf32>
    %15 = arith.mulf %14, %14 : vector<16x32xf32>
    %cst_11 = arith.constant dense<0.000000e+00> : vector<16xf32>
    %16 = vector.multi_reduction <add>, %15, %cst_11 [1] : vector<16x32xf32> to vector<16xf32>
    %17 = vector.shape_cast %16 : vector<16xf32> to vector<16x1xf32>
    %cst_12 = arith.constant 3.200000e+01 : f32
    %18 = vector.broadcast %cst_12 : f32 to vector<16x1xf32>
    %19 = arith.divf %17, %18 : vector<16x1xf32>
    %cst_13 = arith.constant 9.99999974E-6 : f32
    %20 = vector.broadcast %cst_13 : f32 to vector<16x1xf32>
    %21 = arith.addf %19, %20 : vector<16x1xf32>
    %22 = math.rsqrt %21 : vector<16x1xf32>
    %23 = vector.broadcast %22 : vector<16x1xf32> to vector<16x32xf32>
    %24 = arith.mulf %14, %23 : vector<16x32xf32>
    %25 = vector.broadcast %6 : vector<1x32xf32> to vector<16x32xf32>
    %26 = arith.mulf %24, %25 : vector<16x32xf32>
    %27 = vector.broadcast %8 : vector<1x32xf32> to vector<16x32xf32>
    %28 = arith.addf %26, %27 : vector<16x32xf32>
    %29 = arith.truncf %28 : vector<16x32xf32> to vector<16x32xbf16>
    %c0_14 = arith.constant 0 : index
    %c0_15 = arith.constant 0 : index
    %c0_16 = arith.constant 0 : index
    %30 = vector.load %arg9[%c0_14, %c0_15, %c0_16] : memref<1x32x32xbf16, #tpu.memory_space<vmem>>, vector<1x32x32xbf16>
    %31 = vector.shape_cast %30 : vector<1x32x32xbf16> to vector<32x32xbf16>
    %cst_17 = arith.constant dense<0.000000e+00> : vector<16x32xf32>
    %32 = tpu.matmul %29, %31, %cst_17 {dimension_numbers = #tpu.dot_dimension_numbers<[1], [0], [0], [1], [0, 0, 1, 1], [], []>} : vector<16x32xbf16>, vector<32x32xbf16>, vector<16x32xf32> -> vector<16x32xf32>
    %c0_18 = arith.constant 0 : index
    %c0_19 = arith.constant 0 : index
    %c0_20 = arith.constant 0 : index
    %33 = vector.load %arg10[%c0_18, %c0_19, %c0_20] : memref<1x1x32xf32, #tpu.memory_space<vmem>>, vector<1x1x32xf32>
    %34 = vector.shape_cast %33 : vector<1x1x32xf32> to vector<1x32xf32>
    %35 = vector.broadcast %34 : vector<1x32xf32> to vector<16x32xf32>
    %36 = arith.addf %32, %35 : vector<16x32xf32>
    %37 = arith.truncf %36 : vector<16x32xf32> to vector<16x32xbf16>
    %c0_21 = arith.constant 0 : index
    %c0_22 = arith.constant 0 : index
    %c0_23 = arith.constant 0 : index
    %38 = vector.load %arg11[%c0_21, %c0_22, %c0_23] : memref<1x32x32xbf16, #tpu.memory_space<vmem>>, vector<1x32x32xbf16>
    %39 = vector.shape_cast %38 : vector<1x32x32xbf16> to vector<32x32xbf16>
    %cst_24 = arith.constant dense<0.000000e+00> : vector<16x32xf32>
    %40 = tpu.matmul %29, %39, %cst_24 {dimension_numbers = #tpu.dot_dimension_numbers<[1], [0], [0], [1], [0, 0, 1, 1], [], []>} : vector<16x32xbf16>, vector<32x32xbf16>, vector<16x32xf32> -> vector<16x32xf32>
    %c0_25 = arith.constant 0 : index
    %c0_26 = arith.constant 0 : index
    %c0_27 = arith.constant 0 : index
    %41 = vector.load %arg12[%c0_25, %c0_26, %c0_27] : memref<1x1x32xf32, #tpu.memory_space<vmem>>, vector<1x1x32xf32>
    %42 = vector.shape_cast %41 : vector<1x1x32xf32> to vector<1x32xf32>
    %43 = vector.broadcast %42 : vector<1x32xf32> to vector<16x32xf32>
    %44 = arith.addf %40, %43 : vector<16x32xf32>
    %45 = arith.truncf %44 : vector<16x32xf32> to vector<16x32xbf16>
    %c0_28 = arith.constant 0 : index
    %c0_29 = arith.constant 0 : index
    %c0_30 = arith.constant 0 : index
    %46 = vector.load %arg13[%c0_28, %c0_29, %c0_30] : memref<1x32x32xbf16, #tpu.memory_space<vmem>>, vector<1x32x32xbf16>
    %47 = vector.shape_cast %46 : vector<1x32x32xbf16> to vector<32x32xbf16>
    %cst_31 = arith.constant dense<0.000000e+00> : vector<16x32xf32>
    %48 = tpu.matmul %29, %47, %cst_31 {dimension_numbers = #tpu.dot_dimension_numbers<[1], [0], [0], [1], [0, 0, 1, 1], [], []>} : vector<16x32xbf16>, vector<32x32xbf16>, vector<16x32xf32> -> vector<16x32xf32>
    %c0_32 = arith.constant 0 : index
    %c0_33 = arith.constant 0 : index
    %c0_34 = arith.constant 0 : index
    %49 = vector.load %arg14[%c0_32, %c0_33, %c0_34] : memref<1x1x32xf32, #tpu.memory_space<vmem>>, vector<1x1x32xf32>
    %50 = vector.shape_cast %49 : vector<1x1x32xf32> to vector<1x32xf32>
    %51 = vector.broadcast %50 : vector<1x32xf32> to vector<16x32xf32>
    %52 = arith.addf %48, %51 : vector<16x32xf32>
    %53 = arith.truncf %52 : vector<16x32xf32> to vector<16x32xbf16>
    %54 = tpu.concatenate %45, %45, %45, %45 in 0 : vector<16x32xbf16>, vector<16x32xbf16>, vector<16x32xbf16>, vector<16x32xbf16> -> vector<64x32xbf16>
    %55 = tpu.concatenate %53, %53, %53, %53 in 0 : vector<16x32xbf16>, vector<16x32xbf16>, vector<16x32xbf16>, vector<16x32xbf16> -> vector<64x32xbf16>
    %56 = arith.mulf %54, %4 : vector<64x32xbf16>
    %57 = arith.mulf %55, %4 : vector<64x32xbf16>
    %cst_35 = arith.constant dense<0.000000e+00> : vector<16x64xf32>
    %58 = tpu.matmul %37, %56, %cst_35 {dimension_numbers = #tpu.dot_dimension_numbers<[1], [1], [0], [0], [0, 0, 1, 0], [], []>} : vector<16x32xbf16>, vector<64x32xbf16>, vector<16x64xf32> -> vector<16x64xf32>
    %c0_36 = arith.constant 0 : index
    %c0_37 = arith.constant 0 : index
    %59 = vector.load %arg5[%c0_36, %c0_37] : memref<16x64xf32, #tpu.memory_space<vmem>>, vector<16x64xf32>
    %60 = arith.addf %58, %59 : vector<16x64xf32>
    %cst_38 = arith.constant dense<0xFF800000> : vector<16xf32>
    %61 = vector.multi_reduction <maximumf>, %60, %cst_38 [1] : vector<16x64xf32> to vector<16xf32>
    %62 = vector.shape_cast %61 : vector<16xf32> to vector<16x1xf32>
    %63 = vector.broadcast %62 : vector<16x1xf32> to vector<16x64xf32>
    %64 = arith.subf %60, %63 : vector<16x64xf32>
    %65 = math.exp %64 : vector<16x64xf32>
    %66 = tpu.concatenate %57, %4 in 1 : vector<64x32xbf16>, vector<64x32xbf16> -> vector<64x64xbf16>
    %67 = arith.truncf %65 : vector<16x64xf32> to vector<16x64xbf16>
    %cst_39 = arith.constant dense<0.000000e+00> : vector<16x64xf32>
    %68 = tpu.matmul %67, %66, %cst_39 {dimension_numbers = #tpu.dot_dimension_numbers<[1], [0], [0], [1], [0, 0, 1, 1], [], []>} : vector<16x64xbf16>, vector<64x64xbf16>, vector<16x64xf32> -> vector<16x64xf32>
    %69 = vector.extract_strided_slice %68 {offsets = [0, 0], sizes = [16, 32], strides = [1, 1]} : vector<16x64xf32> to vector<16x32xf32>
    %70 = vector.extract_strided_slice %68 {offsets = [0, 32], sizes = [16, 32], strides = [1, 1]} : vector<16x64xf32> to vector<16x32xf32>
    %71 = tpu.reciprocal %70 : vector<16x32xf32> -> vector<16x32xf32>
    %72 = arith.mulf %69, %71 : vector<16x32xf32>
    %c0_40 = arith.constant 0 : index
    %c0_41 = arith.constant 0 : index
    %c0_42 = arith.constant 0 : index
    %73 = vector.load %arg15[%c0_40, %c0_41, %c0_42] : memref<1x32x32xbf16, #tpu.memory_space<vmem>>, vector<1x32x32xbf16>
    %74 = vector.shape_cast %73 : vector<1x32x32xbf16> to vector<32x32xbf16>
    %75 = arith.truncf %72 : vector<16x32xf32> to vector<16x32xbf16>
    %cst_43 = arith.constant dense<0.000000e+00> : vector<16x32xf32>
    %76 = tpu.matmul %75, %74, %cst_43 {dimension_numbers = #tpu.dot_dimension_numbers<[1], [0], [0], [1], [0, 0, 1, 1], [], []>} : vector<16x32xbf16>, vector<32x32xbf16>, vector<16x32xf32> -> vector<16x32xf32>
    %77 = arith.addf %3, %76 : vector<16x32xf32>
    %c0_44 = arith.constant 0 : index
    %c0_45 = arith.constant 0 : index
    %c0_46 = arith.constant 0 : index
    %78 = vector.load %arg16[%c0_44, %c0_45, %c0_46] : memref<1x1x32xf32, #tpu.memory_space<vmem>>, vector<1x1x32xf32>
    %79 = vector.shape_cast %78 : vector<1x1x32xf32> to vector<1x32xf32>
    %80 = vector.broadcast %79 : vector<1x32xf32> to vector<16x32xf32>
    %81 = arith.addf %77, %80 : vector<16x32xf32>
    %c0_47 = arith.constant 0 : index
    %c0_48 = arith.constant 0 : index
    %c0_49 = arith.constant 0 : index
    %82 = vector.load %arg17[%c0_47, %c0_48, %c0_49] : memref<1x1x32xf32, #tpu.memory_space<vmem>>, vector<1x1x32xf32>
    %83 = vector.shape_cast %82 : vector<1x1x32xf32> to vector<1x32xf32>
    %c0_50 = arith.constant 0 : index
    %c0_51 = arith.constant 0 : index
    %c0_52 = arith.constant 0 : index
    %84 = vector.load %arg18[%c0_50, %c0_51, %c0_52] : memref<1x1x32xf32, #tpu.memory_space<vmem>>, vector<1x1x32xf32>
    %85 = vector.shape_cast %84 : vector<1x1x32xf32> to vector<1x32xf32>
    %cst_53 = arith.constant dense<0.000000e+00> : vector<16xf32>
    %86 = vector.multi_reduction <add>, %81, %cst_53 [1] : vector<16x32xf32> to vector<16xf32>
    %87 = vector.shape_cast %86 : vector<16xf32> to vector<16x1xf32>
    %cst_54 = arith.constant 3.200000e+01 : f32
    %88 = vector.broadcast %cst_54 : f32 to vector<16x1xf32>
    %89 = arith.divf %87, %88 : vector<16x1xf32>
    %90 = vector.broadcast %89 : vector<16x1xf32> to vector<16x32xf32>
    %91 = arith.subf %81, %90 : vector<16x32xf32>
    %92 = arith.mulf %91, %91 : vector<16x32xf32>
    %cst_55 = arith.constant dense<0.000000e+00> : vector<16xf32>
    %93 = vector.multi_reduction <add>, %92, %cst_55 [1] : vector<16x32xf32> to vector<16xf32>
    %94 = vector.shape_cast %93 : vector<16xf32> to vector<16x1xf32>
    %cst_56 = arith.constant 3.200000e+01 : f32
    %95 = vector.broadcast %cst_56 : f32 to vector<16x1xf32>
    %96 = arith.divf %94, %95 : vector<16x1xf32>
    %cst_57 = arith.constant 9.99999974E-6 : f32
    %97 = vector.broadcast %cst_57 : f32 to vector<16x1xf32>
    %98 = arith.addf %96, %97 : vector<16x1xf32>
    %99 = math.rsqrt %98 : vector<16x1xf32>
    %100 = vector.broadcast %99 : vector<16x1xf32> to vector<16x32xf32>
    %101 = arith.mulf %91, %100 : vector<16x32xf32>
    %102 = vector.broadcast %83 : vector<1x32xf32> to vector<16x32xf32>
    %103 = arith.mulf %101, %102 : vector<16x32xf32>
    %104 = vector.broadcast %85 : vector<1x32xf32> to vector<16x32xf32>
    %105 = arith.addf %103, %104 : vector<16x32xf32>
    %c0_58 = arith.constant 0 : index
    %c0_59 = arith.constant 0 : index
    %c0_60 = arith.constant 0 : index
    %106 = vector.load %arg19[%c0_58, %c0_59, %c0_60] : memref<1x32x64xbf16, #tpu.memory_space<vmem>>, vector<1x32x64xbf16>
    %107 = vector.shape_cast %106 : vector<1x32x64xbf16> to vector<32x64xbf16>
    %108 = arith.truncf %105 : vector<16x32xf32> to vector<16x32xbf16>
    %cst_61 = arith.constant dense<0.000000e+00> : vector<16x64xf32>
    %109 = tpu.matmul %108, %107, %cst_61 {dimension_numbers = #tpu.dot_dimension_numbers<[1], [0], [0], [1], [0, 0, 1, 1], [], []>} : vector<16x32xbf16>, vector<32x64xbf16>, vector<16x64xf32> -> vector<16x64xf32>
    %c0_62 = arith.constant 0 : index
    %c0_63 = arith.constant 0 : index
    %c0_64 = arith.constant 0 : index
    %110 = vector.load %arg20[%c0_62, %c0_63, %c0_64] : memref<1x1x64xf32, #tpu.memory_space<vmem>>, vector<1x1x64xf32>
    %111 = vector.shape_cast %110 : vector<1x1x64xf32> to vector<1x64xf32>
    %112 = vector.broadcast %111 : vector<1x64xf32> to vector<16x64xf32>
    %113 = arith.addf %109, %112 : vector<16x64xf32>
    %cst_65 = arith.constant 0.000000e+00 : f32
    %114 = vector.broadcast %cst_65 : f32 to vector<16x64xf32>
    %115 = arith.maximumf %113, %114 : vector<16x64xf32>
    %c0_66 = arith.constant 0 : index
    %c0_67 = arith.constant 0 : index
    %c0_68 = arith.constant 0 : index
    %116 = vector.load %arg21[%c0_66, %c0_67, %c0_68] : memref<1x64x32xbf16, #tpu.memory_space<vmem>>, vector<1x64x32xbf16>
    %117 = vector.shape_cast %116 : vector<1x64x32xbf16> to vector<64x32xbf16>
    %118 = arith.truncf %115 : vector<16x64xf32> to vector<16x64xbf16>
    %cst_69 = arith.constant dense<0.000000e+00> : vector<16x32xf32>
    %119 = tpu.matmul %118, %117, %cst_69 {dimension_numbers = #tpu.dot_dimension_numbers<[1], [0], [0], [1], [0, 0, 1, 1], [], []>} : vector<16x64xbf16>, vector<64x32xbf16>, vector<16x32xf32> -> vector<16x32xf32>
    %120 = arith.addf %81, %119 : vector<16x32xf32>
    %c0_70 = arith.constant 0 : index
    %c0_71 = arith.constant 0 : index
    %c0_72 = arith.constant 0 : index
    %121 = vector.load %arg22[%c0_70, %c0_71, %c0_72] : memref<1x1x32xf32, #tpu.memory_space<vmem>>, vector<1x1x32xf32>
    %122 = vector.shape_cast %121 : vector<1x1x32xf32> to vector<1x32xf32>
    %123 = vector.broadcast %122 : vector<1x32xf32> to vector<16x32xf32>
    %124 = arith.addf %120, %123 : vector<16x32xf32>
    %c0_73 = arith.constant 0 : index
    %c0_74 = arith.constant 0 : index
    %125 = vector.load %arg28[%c0_73, %c0_74] : memref<16x32xf32, #tpu.memory_space<vmem>>, vector<16x32xf32>
    tpu.vector_store %arg28[%c0_73, %c0_74], %124 {strides = array<i32>} : memref<16x32xf32, #tpu.memory_space<vmem>>, vector<16x32xf32>,
    %c1_i32 = arith.constant 1 : i32
    %126 = arith.cmpi eq, %arg0, %c1_i32 : i32
    %127 = arith.extui %126 : i1 to i32
    %c0_i32_75 = arith.constant 0 : i32
    %128 = arith.cmpi ne, %127, %c0_i32_75 : i32
    scf.if %128 {
      %c0_76 = arith.constant 0 : index
      %c0_77 = arith.constant 0 : index
      %129 = vector.load %arg6[%c0_76, %c0_77] : memref<2x16xf32, #tpu.memory_space<vmem>>, vector<2x16xf32>
      %cst_78 = arith.constant dense<0.000000e+00> : vector<2x32xf32>
      %130 = tpu.matmul %129, %124, %cst_78 {dimension_numbers = #tpu.dot_dimension_numbers<[1], [0], [0], [1], [0, 0, 1, 1], [], []>} : vector<2x16xf32>, vector<16x32xf32>, vector<2x32xf32> -> vector<2x32xf32>
      %c0_79 = arith.constant 0 : index
      %c0_80 = arith.constant 0 : index
      %131 = vector.load %arg23[%c0_79, %c0_80] : memref<1x32xf32, #tpu.memory_space<vmem>>, vector<1x32xf32>
      %c0_81 = arith.constant 0 : index
      %c0_82 = arith.constant 0 : index
      %132 = vector.load %arg24[%c0_81, %c0_82] : memref<1x32xf32, #tpu.memory_space<vmem>>, vector<1x32xf32>
      %cst_83 = arith.constant dense<0.000000e+00> : vector<2xf32>
      %133 = vector.multi_reduction <add>, %130, %cst_83 [1] : vector<2x32xf32> to vector<2xf32>
      %134 = vector.shape_cast %133 : vector<2xf32> to vector<2x1xf32>
      %cst_84 = arith.constant 3.200000e+01 : f32
      %135 = vector.broadcast %cst_84 : f32 to vector<2x1xf32>
      %136 = arith.divf %134, %135 : vector<2x1xf32>
      %137 = vector.broadcast %136 : vector<2x1xf32> to vector<2x32xf32>
      %138 = arith.subf %130, %137 : vector<2x32xf32>
      %139 = arith.mulf %138, %138 : vector<2x32xf32>
      %cst_85 = arith.constant dense<0.000000e+00> : vector<2xf32>
      %140 = vector.multi_reduction <add>, %139, %cst_85 [1] : vector<2x32xf32> to vector<2xf32>
      %141 = vector.shape_cast %140 : vector<2xf32> to vector<2x1xf32>
      %cst_86 = arith.constant 3.200000e+01 : f32
      %142 = vector.broadcast %cst_86 : f32 to vector<2x1xf32>
      %143 = arith.divf %141, %142 : vector<2x1xf32>
      %cst_87 = arith.constant 9.99999974E-6 : f32
      %144 = vector.broadcast %cst_87 : f32 to vector<2x1xf32>
      %145 = arith.addf %143, %144 : vector<2x1xf32>
      %146 = math.rsqrt %145 : vector<2x1xf32>
      %147 = vector.broadcast %146 : vector<2x1xf32> to vector<2x32xf32>
      %148 = arith.mulf %138, %147 : vector<2x32xf32>
      %149 = vector.broadcast %131 : vector<1x32xf32> to vector<2x32xf32>
      %150 = arith.mulf %148, %149 : vector<2x32xf32>
      %151 = vector.broadcast %132 : vector<1x32xf32> to vector<2x32xf32>
      %152 = arith.addf %150, %151 : vector<2x32xf32>
      %c0_88 = arith.constant 0 : index
      %c0_89 = arith.constant 0 : index
      %153 = vector.load %arg25[%c0_88, %c0_89] : memref<32x32xbf16, #tpu.memory_space<vmem>>, vector<32x32xbf16>
      %154 = arith.truncf %152 : vector<2x32xf32> to vector<2x32xbf16>
      %cst_90 = arith.constant dense<0.000000e+00> : vector<2x32xf32>
      %155 = tpu.matmul %154, %153, %cst_90 {dimension_numbers = #tpu.dot_dimension_numbers<[1], [0], [0], [1], [0, 0, 1, 1], [], []>} : vector<2x32xbf16>, vector<32x32xbf16>, vector<2x32xf32> -> vector<2x32xf32>
      %c0_91 = arith.constant 0 : index
      %c0_92 = arith.constant 0 : index
      %156 = vector.load %arg26[%c0_91, %c0_92] : memref<1x32xf32, #tpu.memory_space<vmem>>, vector<1x32xf32>
      %157 = vector.broadcast %156 : vector<1x32xf32> to vector<2x32xf32>
      %158 = arith.addf %155, %157 : vector<2x32xf32>
      %c0_93 = arith.constant 0 : index
      %c0_94 = arith.constant 0 : index
      %159 = vector.load %arg27[%c0_93, %c0_94] : memref<2x32xf32, #tpu.memory_space<vmem>>, vector<2x32xf32>
      tpu.vector_store %arg27[%c0_93, %c0_94], %158 {strides = array<i32>} : memref<2x32xf32, #tpu.memory_space<vmem>>, vector<2x32xf32>,
    } else {
    }
    return
  }
  func.func @transform_0(%arg0: i32) -> (i32, i32) {
    %c0_i32 = arith.constant 0 : i32
    %c0_i32_0 = arith.constant 0 : i32
    %c0_i32_1 = arith.constant 0 : i32
    return %c0_i32, %c0_i32_0 : i32, i32
  }
  func.func @transform_1(%arg0: i32) -> (i32, i32) {
    %c0_i32 = arith.constant 0 : i32
    %c0_i32_0 = arith.constant 0 : i32
    %c0_i32_1 = arith.constant 0 : i32
    return %c0_i32, %c0_i32_0 : i32, i32
  }
  func.func @transform_2(%arg0: i32) -> (i32, i32) {
    %c0_i32 = arith.constant 0 : i32
    %c0_i32_0 = arith.constant 0 : i32
    %c0_i32_1 = arith.constant 0 : i32
    return %c0_i32, %c0_i32_0 : i32, i32
  }
  func.func @transform_3(%arg0: i32) -> (i32, i32) {
    %c0_i32 = arith.constant 0 : i32
    %c0_i32_0 = arith.constant 0 : i32
    %c0_i32_1 = arith.constant 0 : i32
    return %c0_i32, %c0_i32_0 : i32, i32
  }
  func.func @transform_4(%arg0: i32) -> (i32, i32) {
    %c0_i32 = arith.constant 0 : i32
    %c0_i32_0 = arith.constant 0 : i32
    %c0_i32_1 = arith.constant 0 : i32
    return %c0_i32, %c0_i32_0 : i32, i32
  }
  func.func @transform_5(%arg0: i32) -> (i32, i32) {
    %c0_i32 = arith.constant 0 : i32
    %c0_i32_0 = arith.constant 0 : i32
    %c0_i32_1 = arith.constant 0 : i32
    return %c0_i32, %c0_i32_0 : i32, i32
  }
  func.func @transform_6(%arg0: i32) -> (i32, i32, i32) {
    %c0_i32 = arith.constant 0 : i32
    %c0_i32_0 = arith.constant 0 : i32
    %c0_i32_1 = arith.constant 0 : i32
    return %arg0, %c0_i32, %c0_i32_0 : i32, i32, i32
  }
  func.func @transform_7(%arg0: i32) -> (i32, i32, i32) {
    %c0_i32 = arith.constant 0 : i32
    %c0_i32_0 = arith.constant 0 : i32
    %c0_i32_1 = arith.constant 0 : i32
    return %arg0, %c0_i32, %c0_i32_0 : i32, i32, i32
  }
  func.func @transform_8(%arg0: i32) -> (i32, i32, i32) {
    %c0_i32 = arith.constant 0 : i32
    %c0_i32_0 = arith.constant 0 : i32
    %c0_i32_1 = arith.constant 0 : i32
    return %arg0, %c0_i32, %c0_i32_0 : i32, i32, i32
  }
  func.func @transform_9(%arg0: i32) -> (i32, i32, i32) {
    %c0_i32 = arith.constant 0 : i32
    %c0_i32_0 = arith.constant 0 : i32
    %c0_i32_1 = arith.constant 0 : i32
    return %arg0, %c0_i32, %c0_i32_0 : i32, i32, i32
  }
  func.func @transform_10(%arg0: i32) -> (i32, i32, i32) {
    %c0_i32 = arith.constant 0 : i32
    %c0_i32_0 = arith.constant 0 : i32
    %c0_i32_1 = arith.constant 0 : i32
    return %arg0, %c0_i32, %c0_i32_0 : i32, i32, i32
  }
  func.func @transform_11(%arg0: i32) -> (i32, i32, i32) {
    %c0_i32 = arith.constant 0 : i32
    %c0_i32_0 = arith.constant 0 : i32
    %c0_i32_1 = arith.constant 0 : i32
    return %arg0, %c0_i32, %c0_i32_0 : i32, i32, i32
  }
  func.func @transform_12(%arg0: i32) -> (i32, i32, i32) {
    %c0_i32 = arith.constant 0 : i32
    %c0_i32_0 = arith.constant 0 : i32
    %c0_i32_1 = arith.constant 0 : i32
    return %arg0, %c0_i32, %c0_i32_0 : i32, i32, i32
  }
  func.func @transform_13(%arg0: i32) -> (i32, i32, i32) {
    %c0_i32 = arith.constant 0 : i32
    %c0_i32_0 = arith.constant 0 : i32
    %c0_i32_1 = arith.constant 0 : i32
    return %arg0, %c0_i32, %c0_i32_0 : i32, i32, i32
  }
  func.func @transform_14(%arg0: i32) -> (i32, i32, i32) {
    %c0_i32 = arith.constant 0 : i32
    %c0_i32_0 = arith.constant 0 : i32
    %c0_i32_1 = arith.constant 0 : i32
    return %arg0, %c0_i32, %c0_i32_0 : i32, i32, i32
  }
  func.func @transform_15(%arg0: i32) -> (i32, i32, i32) {
    %c0_i32 = arith.constant 0 : i32
    %c0_i32_0 = arith.constant 0 : i32
    %c0_i32_1 = arith.constant 0 : i32
    return %arg0, %c0_i32, %c0_i32_0 : i32, i32, i32
  }
  func.func @transform_16(%arg0: i32) -> (i32, i32, i32) {
    %c0_i32 = arith.constant 0 : i32
    %c0_i32_0 = arith.constant 0 : i32
    %c0_i32_1 = arith.constant 0 : i32
    return %arg0, %c0_i32, %c0_i32_0 : i32, i32, i32
  }
  func.func @transform_17(%arg0: i32) -> (i32, i32, i32) {
    %c0_i32 = arith.constant 0 : i32
    %c0_i32_0 = arith.constant 0 : i32
    %c0_i32_1 = arith.constant 0 : i32
    return %arg0, %c0_i32, %c0_i32_0 : i32, i32, i32
  }
  func.func @transform_18(%arg0: i32) -> (i32, i32, i32) {
    %c0_i32 = arith.constant 0 : i32
    %c0_i32_0 = arith.constant 0 : i32
    %c0_i32_1 = arith.constant 0 : i32
    return %arg0, %c0_i32, %c0_i32_0 : i32, i32, i32
  }
  func.func @transform_19(%arg0: i32) -> (i32, i32, i32) {
    %c0_i32 = arith.constant 0 : i32
    %c0_i32_0 = arith.constant 0 : i32
    %c0_i32_1 = arith.constant 0 : i32
    return %arg0, %c0_i32, %c0_i32_0 : i32, i32, i32
  }
  func.func @transform_20(%arg0: i32) -> (i32, i32, i32) {
    %c0_i32 = arith.constant 0 : i32
    %c0_i32_0 = arith.constant 0 : i32
    %c0_i32_1 = arith.constant 0 : i32
    return %arg0, %c0_i32, %c0_i32_0 : i32, i32, i32
  }
  func.func @transform_21(%arg0: i32) -> (i32, i32, i32) {
    %c0_i32 = arith.constant 0 : i32
    %c0_i32_0 = arith.constant 0 : i32
    %c0_i32_1 = arith.constant 0 : i32
    return %arg0, %c0_i32, %c0_i32_0 : i32, i32, i32
  }
  func.func @transform_22(%arg0: i32) -> (i32, i32) {
    %c0_i32 = arith.constant 0 : i32
    %c0_i32_0 = arith.constant 0 : i32
    %c0_i32_1 = arith.constant 0 : i32
    return %c0_i32, %c0_i32_0 : i32, i32
  }
  func.func @transform_23(%arg0: i32) -> (i32, i32) {
    %c0_i32 = arith.constant 0 : i32
    %c0_i32_0 = arith.constant 0 : i32
    %c0_i32_1 = arith.constant 0 : i32
    return %c0_i32, %c0_i32_0 : i32, i32
  }
  func.func @transform_24(%arg0: i32) -> (i32, i32) {
    %c0_i32 = arith.constant 0 : i32
    %c0_i32_0 = arith.constant 0 : i32
    %c0_i32_1 = arith.constant 0 : i32
    return %c0_i32, %c0_i32_0 : i32, i32
  }
  func.func @transform_25(%arg0: i32) -> (i32, i32) {
    %c0_i32 = arith.constant 0 : i32
    %c0_i32_0 = arith.constant 0 : i32
    %c0_i32_1 = arith.constant 0 : i32
    return %c0_i32, %c0_i32_0 : i32, i32
  }
  func.func @transform_26(%arg0: i32) -> (i32, i32) {
    %c0_i32 = arith.constant 0 : i32
    %c0_i32_0 = arith.constant 0 : i32
    %c0_i32_1 = arith.constant 0 : i32
    return %c0_i32, %c0_i32_0 : i32, i32
  }
}

</mosaic_0001>

<bundles_post_ra>
// kernel: tpu_custom_call.1
= control target key start
LH: loop header
LB: loop body
LE: loop exit
PB: predicated region body
PF: predicated region fallthrough
CT: control target
= control target key end

     0   :  { %s3799_s0 = inlined_call_operand.vmem [shape: f32[16,4], index: 0, kind: input, shape index: {}]   ;;  %s3800_s1 = inlined_call_operand.hbm [shape: bf16[4,32], index: 1, kind: input, shape index: {}]   ;;  %s3801_s2 = inlined_call_operand.hbm [shape: f32[1,32], index: 2, kind: input, shape index: {}]   ;;  %s3802_s3 = inlined_call_operand.vmem [shape: bf16[64,32], index: 3, kind: input, shape index: {}]   ;;  %s3803_s4 = inlined_call_operand.hbm [shape: f32[16,64], index: 4, kind: input, shape index: {}]   ;;  %s3804_s5 = inlined_call_operand.hbm [shape: f32[2,16], index: 5, kind: input, shape index: {}]   ;;  %s3805_s6 = inlined_call_operand.hbm [shape: f32[2,1,32], index: 6, kind: input, shape index: {}]   ;;  %s3806_s7 = inlined_call_operand.hbm [shape: f32[2,1,32], index: 7, kind: input, shape index: {}]   ;;  %s3807_s8 = inlined_call_operand.vmem [shape: bf16[2,32,32], index: 8, kind: input, shape index: {}]   ;;  %s3808_s9 = inlined_call_operand.hbm [shape: f32[2,1,32], index: 9, kind: input, shape index: {}]   ;;  %s3809_s10 = inlined_call_operand.vmem [shape: bf16[2,32,32], index: 10, kind: input, shape index: {}]   ;;  %s3810_s11 = inlined_call_operand.hbm [shape: f32[2,1,32], index: 11, kind: input, shape index: {}]   ;;  %s3811_s12 = inlined_call_operand.vmem [shape: bf16[2,32,32], index: 12, kind: input, shape index: {}]   ;;  %s3812_s13 = inlined_call_operand.vmem [shape: f32[2,1,32], index: 13, kind: input, shape index: {}]   ;;  %s3813_s14 = inlined_call_operand.vmem [shape: bf16[2,32,32], index: 14, kind: input, shape index: {}]   ;;  %s3814_s15 = inlined_call_operand.vmem [shape: f32[2,1,32], index: 15, kind: input, shape index: {}]   ;;  %s3815_s16 = inlined_call_operand.vmem [shape: f32[2,1,32], index: 16, kind: input, shape index: {}]   ;;  %s3816_s17 = inlined_call_operand.vmem [shape: f32[2,1,32], index: 17, kind: input, shape index: {}]   ;;  %s3817_s18 = inlined_call_operand.vmem [shape: bf16[2,32,64], index: 18, kind: input, shape index: {}]   ;;  %s3818_s19 = inlined_call_operand.vmem [shape: f32[2,1,64], index: 19, kind: input, shape index: {}]   ;;  %s3819_s20 = inlined_call_operand.vmem [shape: bf16[2,64,32], index: 20, kind: input, shape index: {}]   ;;  %s3820_s21 = inlined_call_operand.vmem [shape: f32[2,1,32], index: 21, kind: input, shape index: {}]   ;;  %s3821_s22 = inlined_call_operand.vmem [shape: f32[1,32], index: 22, kind: input, shape index: {}]   ;;  %s3822_s23 = inlined_call_operand.vmem [shape: f32[1,32], index: 23, kind: input, shape index: {}]   ;;  %s3823_s24 = inlined_call_operand.vmem [shape: bf16[32,32], index: 24, kind: input, shape index: {}]   ;;  %s3824_s25 = inlined_call_operand.vmem [shape: f32[1,32], index: 25, kind: input, shape index: {}]   ;;  %s3825_s26 = inlined_call_operand.hbm [shape: f32[2,32], index: 26, kind: output, shape index: {}]  }
   0x1   :  { %3858 = sst [smem:[#allocation24_spill]] %s3799_s0 }
   0x2   :  { %3859 = sst [smem:[#allocation25_spill]] %s3800_s1 }
   0x3   :  { %3860 = sst [smem:[#allocation26_spill]] %s3801_s2 }
   0x4   :  { %3861 = sst [smem:[#allocation27_spill]] %s3802_s3 }
   0x5   :  { %3862 = sst [smem:[#allocation28_spill]] %s3803_s4 }
   0x6   :  { %3863 = sst [smem:[#allocation29_spill]] %s3804_s5 }
   0x7   :  { %3864 = sst [smem:[#allocation30_spill]] %s3805_s6 }
   0x8   :  { %3865 = sst [smem:[#allocation31_spill]] %s3806_s7 }
   0x9   :  { %3866 = sst [smem:[#allocation32_spill]] %s3807_s8 }
   0xa   :  { %3867 = sst [smem:[#allocation33_spill]] %s3808_s9 }
   0xb   :  { %3868 = sst [smem:[#allocation34_spill]] %s3809_s10 }
   0xc   :  { %3869 = sst [smem:[#allocation35_spill]] %s3810_s11 }
   0xd   :  { %3870 = sst [smem:[#allocation36_spill]] %s3811_s12 }
   0xe   :  { %3871 = sst [smem:[#allocation37_spill]] %s3813_s14 }
   0xf   :  { %3872 = sst [smem:[#allocation38_spill]] %s3814_s15 }
  0x10   :  { %3873 = sst [smem:[#allocation39_spill]] %s3815_s16 }
  0x11   :  { %3874 = sst [smem:[#allocation40_spill]] %s3816_s17 }
  0x12   :  { %3875 = sst [smem:[#allocation41_spill]] %s3817_s18 }
  0x13   :  { %3876 = sst [smem:[#allocation42_spill]] %s3818_s19 }
  0x14   :  { %3877 = sst [smem:[#allocation43_spill]] %s3819_s20 }
  0x15   :  { %3878 = sst [smem:[#allocation44_spill]] %s3820_s21 }
  0x16   :  { %3879 = sst [smem:[#allocation45_spill]] %s3821_s22 }
  0x17   :  { %3880 = sst [smem:[#allocation46_spill]] %s3822_s23 }
  0x18   :  { %3881 = sst [smem:[#allocation47_spill]] %s3823_s24 }
  0x19   :  { %3882 = sst [smem:[#allocation48_spill]] %s3824_s25 }
  0x1a   :  { %3883 = sst [smem:[#allocation49_spill]] %s3825_s26 }
  0x1b   :  { %31 = vsyncpa [#allocation4], 0 }
  0x1c   :  { %32 = vsyncpa [#allocation7], 0 }
  0x1d   :  { %33 = vsyncpa [#allocation10], 0 }
  0x1e   :  { %34 = vsyncpa [#allocation5], 0  ;;  %s3207_s27 = smov 0   ;;  %s3209_s3 = smov 0  }
  0x1f   :  { %s3211_s7 = smov 0   ;;  %s3213_s28 = smov 0  }
  0x20 LB: > { %3884 = sst [smem:[#allocation21_spill]] %s3046_s7  ;;  %s3226_s8 = sadd.s32 4294967295, %s3050_s28   ;;  %s3050_s28 = sphi %s3213_s28, %s3952_s28   ;;  %s3046_s7 = sphi %s3211_s7, %s3954_s7   ;;  %s3042_s3 = sphi %s3209_s3, %s3956_s3   ;;  %s3038_s27 = sphi %s3207_s27, %s3955_s27  }
  0x21   : > { %p186_p0 = scmp.ne.s32.totalorder %s3042_s3, %s3038_s27  ;;  %p3838_p1 = scmp.eq.s32.totalorder %s3226_s8, 0 }
  0x22   : > { %p2369_p2 = scmp.ge.s32.totalorder %s3050_s28, 1  ;;  %p692_p3 = scmp.lt.s32.totalorder %s3050_s28, 3 }
  0x23   : > { %p3235_p5 = por %p3838_p1, %p186_p0  ;;  %s3052_s0 = smov [#allocation3]  }
  0x24   : > { %p3239_p6 = pnand %p2369_p2, %p692_p3  ;;  %s708_s9 = sshll.u32 %s3052_s0, 4  ;;  %s709_s9 = int_to_ptr.vmem [resolvable:$true] %s708_s9 }
  0x25   : > { %s3885_s4 = scalar_select %p3235_p5, 1, 0 }
  0x26   : > { %s3886_s29 = scalar_select %p3239_p6, 1, 0 }
  0x27   : > { %p2619_p7 = pneg %p3239_p6  ;;  %s3246_s30 = sadd.s32 1, %s3050_s28  }
  0x28   : > { %3887 = sst [smem:[#allocation22_spill]] %s3246_s30  ;;  %s170_s5 = ssub.s32 %s3050_s28, %s3246_s30 }
  0x29   : > { %p3250_p8 = pnand %p2619_p7, %p3838_p1  ;;  %p3256_p9 = scmp.eq.s32.totalorder %s170_s5, 0 }
  0x2a   : > { %s173_s6 = sadd.s32 1, %s3046_s7  ;;  %s3890_s0 = sld [smem:[#allocation25_spill]] }
  0x2b   : > { %s3888_s2 = scalar_select %p3250_p8, 1, 0 }
  0x2c   : > { %s3889_s10 = scalar_select %p3256_p9, 1, 0 }
  0x2d   : > { %p3271_p12 = pneg %p3250_p8 }
  0x2f   : > { %s3891_s22 = scalar_select %p3271_p12, 1, 0 }
  0x30   : > { %s2742_s26 = scalar_lea.hbm %s3890_s0, 32 }
  0x31   : > { %p2743_p11 = scmp.ne.s32.totalorder %s3890_s0, %s2742_s26  ;;  %p2749_p2 = scmp.lt.u32.totalorder %s2742_s26, %s3890_s0 }
  0x33   : > { %p2745_p13 = pnand %p3271_p12, %p2743_p11 }
  0x35   : > { %p2746_p0 = pneg %p2745_p13 }
  0x37   : > { %p2751_p3 = pnand %p2749_p2, %p2746_p0 }
  0x39   : > { %2754 = shalt.err (!%p2751_p3)
}
  0x3a   : > { %s2755_s1 = scalar_lea.vmem %s709_s9, 32  ;;  %p2763_p10 = scmp.lt.s32.totalorder %s709_s9, %s709_s9 }
  0x3b   : > { %p2756_p7 = scmp.ne.s32.totalorder %s709_s9, %s2755_s1  ;;  %p2764_p5 = scmp.lt.s32.totalorder %s2755_s1, %s2755_s1 }
  0x3d   : > { %p2758_p4 = pnand %p2756_p7, %p3271_p12  ;;  %p2765_p6 = por %p2764_p5, %p2763_p10 }
  0x3f   : > { %p2759_p1 = pneg %p2758_p4 }
  0x41   : > { %p2766_p9 = pnand %p2765_p6, %p2759_p1 }
  0x43   : > { %2769 = shalt.err (!%p2766_p9)
}
  0x44   : > { %2622 = dma.hbm_to_vmem [thread:$0]  (!%p3250_p8), %s3890_s0, 32, %s709_s9, [#allocation4]  }
  0x45   : > { %p3892_p4 = scmp.ne.s32.totalorder %s3889_s10, 0  ;;  %p181_p1 = scmp.eq.s32.totalorder %s3050_s28, 0 }
  0x46   : > { %p2649_p5 = scmp.lt.s32.totalorder %s3050_s28, 2  ;;  %s769_s30 = sand.u32 1, %s3050_s28  }
  0x47   : > { %s3290_s26 = scalar_select %p3892_p4, %s3046_s7, %s173_s6  }
  0x48   : > { %s3296_s27 = sand.u32 1, %s3046_s7   ;;  %p3894_p6 = scmp.ne.s32.totalorder %s3046_s7, %s3042_s3 }
  0x49   : > { %3893 = sst [smem:[#allocation23_spill]] %s3290_s26  ;;  %s3302_s5 = sshll.u32 %s3050_s28, 4 }
  0x4a   : > { %p182_p9 = por %p181_p1, %p3894_p6  ;;  %s3895_s25 = sld [smem:[#allocation30_spill]] }
  0x4b   : > { %s772_s10 = scalar_lea.vmem [#allocation11], %s3296_s27  ;;  %s3897_s7 = sld [smem:[#allocation31_spill]] }
  0x4c   : > { %s779_s6 = sshll.u32 %s772_s10, 4  ;;  %p3313_p10 = pnand %p2649_p5, %p182_p9  ;;  %s3311_s6 = int_to_ptr.vmem [resolvable:$true] %s779_s6 }
  0x4d   : > { %s789_s23 = scalar_lea.vmem [#allocation12], %s3296_s27  ;;  %s3326_s20 = scalar_lea.sflag [#allocation4], %s769_s30 }
  0x4e   : > { %s3896_s0 = scalar_select %p3313_p10, 1, 0 }
  0x4f   : > { %s3324_s21 = sshll.u32 %s789_s23, 4  ;;  %p3332_p13 = pneg %p3313_p10  ;;  %s797_s21 = int_to_ptr.vmem [resolvable:$true] %s3324_s21 }
  0x50   : > { %s3308_s9 = scalar_lea.hbm %s3895_s25, %s3302_s5 }
  0x51   : > { %s3898_s24 = smov %s3897_s7  ;;  %s3321_s1 = scalar_lea.hbm %s3897_s7, %s3302_s5 }
  0x52   : > { %s2770_s19 = scalar_lea.hbm %s3308_s9, 16  ;;  %s2775_s7 = scalar_lea.hbm %s3895_s25, 32 }
  0x53   : > { %p2771_p11 = scmp.ne.s32.totalorder %s3308_s9, %s2770_s19  ;;  %p2776_p3 = scmp.lt.u32.totalorder %s3308_s9, %s3895_s25 }
  0x54   : > { %s3899_s10 = scalar_select %p3332_p13, 1, 0 }
  0x55   : > { %p2773_p0 = pnand %p3332_p13, %p2771_p11  ;;  %p2777_p7 = scmp.lt.u32.totalorder %s2775_s7, %s2770_s19 }
  0x56   : > { %p2779_p1 = scmp.lt.u32.totalorder %s2770_s19, %s3308_s9 }
  0x57   : > { %p2774_p2 = pneg %p2773_p0  ;;  %p2778_p4 = por %p2777_p7, %p2776_p3 }
  0x59   : > { %p2780_p5 = por %p2779_p1, %p2778_p4 }
  0x5b   : > { %p2781_p6 = pnand %p2780_p5, %p2774_p2 }
  0x5d   : > { %2784 = shalt.err (!%p2781_p6)
}
  0x5e   : > { %s2785_s30 = scalar_lea.vmem %s3311_s6, 16  ;;  %s3053_s26 = smov [#allocation11]  }
  0x5f   : > { %p2786_p9 = scmp.ne.s32.totalorder %s3311_s6, %s2785_s30  ;;  %s2790_s28 = sshll.u32 %s3053_s26, 4  ;;  %s2791_s28 = int_to_ptr.vmem [resolvable:$false] %s2790_s28 }
  0x60   : > { %s2792_s18 = scalar_lea.vmem %s2791_s28, 32  ;;  %p2793_p8 = scmp.lt.s32.totalorder %s3311_s6, %s2791_s28 }
  0x61   : > { %p2788_p11 = pnand %p2786_p9, %p3332_p13  ;;  %p2794_p12 = scmp.lt.s32.totalorder %s2792_s18, %s2785_s30 }
  0x63   : > { %p2789_p0 = pneg %p2788_p11  ;;  %p2795_p3 = por %p2794_p12, %p2793_p8 }
  0x65   : > { %p2796_p7 = pnand %p2795_p3, %p2789_p0 }
  0x67   : > { %2799 = shalt.err (!%p2796_p7)
}
  0x68   : > { %2635 = dma.hbm_to_vmem [thread:$0]  (!%p3313_p10), %s3308_s9, 16, %s3311_s6, %s3326_s20  }
  0x69   : > { %s2800_s19 = scalar_lea.hbm %s3321_s1, 16  ;;  %s2805_s30 = scalar_lea.hbm %s3898_s24, 32 }
  0x6a   : > { %p2801_p2 = scmp.ne.s32.totalorder %s3321_s1, %s2800_s19  ;;  %p2806_p12 = scmp.lt.u32.totalorder %s3321_s1, %s3898_s24 }
  0x6b   : > { %p2807_p1 = scmp.lt.u32.totalorder %s2805_s30, %s2800_s19  ;;  %p2809_p6 = scmp.lt.u32.totalorder %s2800_s19, %s3321_s1 }
  0x6c   : > { %p2803_p4 = pnand %p2801_p2, %p3332_p13 }
  0x6d   : > { %p2808_p5 = por %p2807_p1, %p2806_p12 }
  0x6e   : > { %p2804_p8 = pneg %p2803_p4 }
  0x6f   : > { %p2810_p9 = por %p2809_p6, %p2808_p5 }
  0x71   : > { %p2811_p11 = pnand %p2810_p9, %p2804_p8 }
  0x73   : > { %2814 = shalt.err (!%p2811_p11)
}
  0x74   : > { %s2815_s9 = scalar_lea.vmem %s797_s21, 16  ;;  %s3054_s6 = smov [#allocation12]  }
  0x75   : > { %p2816_p0 = scmp.ne.s32.totalorder %s797_s21, %s2815_s9  ;;  %s2820_s18 = sshll.u32 %s3054_s6, 4  ;;  %s2821_s18 = int_to_ptr.vmem [resolvable:$false] %s2820_s18 }
  0x76   : > { %s2822_s7 = scalar_lea.vmem %s2821_s18, 32  ;;  %p2823_p2 = scmp.lt.s32.totalorder %s797_s21, %s2821_s18 }
  0x77   : > { %p2818_p3 = pnand %p2816_p0, %p3332_p13  ;;  %p2824_p4 = scmp.lt.s32.totalorder %s2822_s7, %s2815_s9 }
  0x79   : > { %p2819_p7 = pneg %p2818_p3  ;;  %p2825_p10 = por %p2824_p4, %p2823_p2 }
  0x7b   : > { %p2826_p1 = pnand %p2825_p10, %p2819_p7 }
  0x7d   : > { %2829 = shalt.err (!%p2826_p1)
}
  0x7e   : > { %p3900_p12 = scmp.ne.s32.totalorder %s3896_s0, 0  ;;  %s3055_s19 = smov [#allocation6]  }
  0x7f   : > { %s719_s23 = sshll.u32 %s3055_s19, 4  ;;  %s3901_s28 = sld [smem:[#allocation33_spill]]  ;;  %s720_s23 = int_to_ptr.vmem [resolvable:$true] %s719_s23 }
  0x80   : > { %2638 = dma.hbm_to_vmem [thread:$0]  (!%p3900_p12), %s3321_s1, 16, %s797_s21, %s3326_s20  }
  0x81   : > { %s3903_s7 = sld [smem:[#allocation26_spill]]  ;;  %p3905_p8 = scmp.ne.s32.totalorder %s3891_s22, 0 }
  0x85   : > { %s3902_s6 = smov %s3901_s28  ;;  %s3379_s24 = scalar_lea.hbm %s3901_s28, %s3302_s5 }
  0x87   : > { %s3904_s25 = smov %s3903_s7  ;;  %s2830_s17 = scalar_lea.hbm %s3903_s7, 16 }
  0x88   : > { %p2831_p10 = scmp.ne.s32.totalorder %s3904_s25, %s2830_s17  ;;  %p2837_p9 = scmp.lt.u32.totalorder %s2830_s17, %s3904_s25 }
  0x8a   : > { %p2833_p5 = pnand %p2831_p10, %p3905_p8 }
  0x8c   : > { %p2834_p6 = pneg %p2833_p5 }
  0x8e   : > { %p2839_p11 = pnand %p2837_p9, %p2834_p6 }
  0x90   : > { %2842 = shalt.err (!%p2839_p11)
}
  0x91   : > { %s2843_s19 = scalar_lea.vmem %s720_s23, 16  ;;  %s2850_s30 = scalar_lea.vmem %s720_s23, 32 }
  0x92   : > { %p2844_p0 = scmp.ne.s32.totalorder %s720_s23, %s2843_s19  ;;  %p2851_p2 = scmp.lt.s32.totalorder %s720_s23, %s720_s23 }
  0x93   : > { %p2852_p4 = scmp.lt.s32.totalorder %s2850_s30, %s2843_s19 }
  0x94   : > { %p2846_p3 = pnand %p2844_p0, %p3905_p8 }
  0x95   : > { %p2853_p1 = por %p2852_p4, %p2851_p2 }
  0x96   : > { %p2847_p7 = pneg %p2846_p3 }
  0x98   : > { %p2854_p12 = pnand %p2853_p1, %p2847_p7 }
  0x9a   : > { %2857 = shalt.err (!%p2854_p12)
}
  0x9b   : > { %p3906_p10 = scmp.ne.s32.totalorder %s3888_s2, 0  ;;  %s814_s17 = scalar_lea.vmem [#allocation13], %s3296_s27 }
  0x9c   : > { %s821_s26 = sshll.u32 %s814_s17, 4  ;;  %s3056_s28 = smov [#allocation8]   ;;  %s3400_s26 = int_to_ptr.vmem [resolvable:$true] %s821_s26 }
  0x9d   : > { %2625 = dma.hbm_to_vmem [thread:$0]  (!%p3906_p10), %s3904_s25, 16, %s720_s23, [#allocation7]  }
  0x9e   : > { %s732_s18 = sshll.u32 %s3056_s28, 4  ;;  %s2858_s9 = scalar_lea.hbm %s3379_s24, 16  ;;  %s733_s18 = int_to_ptr.vmem [resolvable:$true] %s732_s18 }
  0x9f   : > { %p2859_p12 = scmp.ne.s32.totalorder %s3379_s24, %s2858_s9  ;;  %s2863_s1 = scalar_lea.hbm %s3902_s6, 32 }
  0xa0   : > { %p2864_p9 = scmp.lt.u32.totalorder %s3379_s24, %s3902_s6  ;;  %p2865_p11 = scmp.lt.u32.totalorder %s2863_s1, %s2858_s9 }
  0xa1   : > { %p2861_p5 = pnand %p2859_p12, %p3332_p13  ;;  %p2867_p3 = scmp.lt.u32.totalorder %s2858_s9, %s3379_s24 }
  0xa2   : > { %p2866_p0 = por %p2865_p11, %p2864_p9 }
  0xa3   : > { %p2862_p6 = pneg %p2861_p5 }
  0xa4   : > { %p2868_p7 = por %p2867_p3, %p2866_p0 }
  0xa6   : > { %p2869_p2 = pnand %p2868_p7, %p2862_p6 }
  0xa8   : > { %2872 = shalt.err (!%p2869_p2)
}
  0xa9   : > { %s2873_s23 = scalar_lea.vmem %s3400_s26, 16  ;;  %s3057_s15 = smov [#allocation13]  }
  0xaa   : > { %p2874_p4 = scmp.ne.s32.totalorder %s3400_s26, %s2873_s23  ;;  %s2878_s16 = sshll.u32 %s3057_s15, 4  ;;  %s2879_s16 = int_to_ptr.vmem [resolvable:$false] %s2878_s16 }
  0xab   : > { %s2880_s17 = scalar_lea.vmem %s2879_s16, 32  ;;  %p2881_p5 = scmp.lt.s32.totalorder %s3400_s26, %s2879_s16 }
  0xac   : > { %p2876_p1 = pnand %p2874_p4, %p3332_p13  ;;  %p2882_p10 = scmp.lt.s32.totalorder %s2880_s17, %s2873_s23 }
  0xae   : > { %p2877_p12 = pneg %p2876_p1  ;;  %p2883_p9 = por %p2882_p10, %p2881_p5 }
  0xb0   : > { %p2884_p11 = pnand %p2883_p9, %p2877_p12 }
  0xb2   : > { %2887 = shalt.err (!%p2884_p11)
}
  0xb3   : > { %p3907_p6 = scmp.ne.s32.totalorder %s3896_s0, 0  ;;  %s3908_s7 = sld [smem:[#allocation28_spill]] }
  0xb5   : > { %2641 = dma.hbm_to_vmem [thread:$0]  (!%p3907_p6), %s3379_s24, 16, %s3400_s26, %s3326_s20  }
  0xb9   : > { %s3909_s21 = smov %s3908_s7  ;;  %s2888_s1 = scalar_lea.hbm %s3908_s7, 256 }
  0xba   : > { %p2889_p0 = scmp.ne.s32.totalorder %s3909_s21, %s2888_s1  ;;  %p2895_p7 = scmp.lt.u32.totalorder %s2888_s1, %s3909_s21 }
  0xbc   : > { %p2891_p10 = pnand %p2889_p0, %p3905_p8 }
  0xbe   : > { %p2892_p3 = pneg %p2891_p10 }
  0xc0   : > { %p2897_p2 = pnand %p2895_p7, %p2892_p3 }
  0xc2   : > { %2900 = shalt.err (!%p2897_p2)
}
  0xc3   : > { %s2901_s16 = scalar_lea.vmem %s733_s18, 256  ;;  %p2909_p5 = scmp.lt.s32.totalorder %s733_s18, %s733_s18 }
  0xc4   : > { %p2902_p4 = scmp.ne.s32.totalorder %s733_s18, %s2901_s16  ;;  %p2910_p9 = scmp.lt.s32.totalorder %s2901_s16, %s2901_s16 }
  0xc6   : > { %p2904_p1 = pnand %p2902_p4, %p3905_p8  ;;  %p2911_p11 = por %p2910_p9, %p2909_p5 }
  0xc8   : > { %p2905_p12 = pneg %p2904_p1 }
  0xca   : > { %p2912_p6 = pnand %p2911_p11, %p2905_p12 }
  0xcc   : > { %2915 = shalt.err (!%p2912_p6)
}
  0xcd   : > { %s3058_s24 = smov 128   ;;  %s3059_s26 = smov 8  }
  0xce   : > { %p3910_p0 = scmp.ne.s32.totalorder %s3888_s2, 0  ;;  %s3060_s9 = smov [#allocation9]  }
  0xcf   : > { %s746_s7 = sshll.u32 %s3060_s9, 4  ;;  %s3911_s11 = sld [smem:[#allocation35_spill]]  ;;  %s747_s7 = int_to_ptr.vmem [resolvable:$true] %s746_s7 }
  0xd0   : > { %2628 = dma.hbm_to_vmem [thread:$0]  (!%p3910_p0), %s3909_s21, 256, %s733_s18, [#allocation7], %s3058_s24, %s3058_s24, %s3059_s26  }
  0xd1   : > { %s3912_s16 = sld [smem:[#allocation29_spill]] }
  0xd5   : > { %s3446_s30 = scalar_lea.hbm %s3911_s11, %s3302_s5 }
  0xd7   : > { %s2916_s6 = scalar_lea.hbm %s3912_s16, 32 }
  0xd8   : > { %p2917_p6 = scmp.ne.s32.totalorder %s3912_s16, %s2916_s6  ;;  %p2923_p7 = scmp.lt.u32.totalorder %s2916_s6, %s3912_s16 }
  0xda   : > { %p2919_p10 = pnand %p2917_p6, %p3905_p8 }
  0xdc   : > { %p2920_p3 = pneg %p2919_p10 }
  0xde   : > { %p2925_p2 = pnand %p2923_p7, %p2920_p3 }
  0xe0   : > { %2928 = shalt.err (!%p2925_p2)
}
  0xe1   : > { %s2929_s26 = scalar_lea.vmem %s747_s7, 32  ;;  %p2937_p5 = scmp.lt.s32.totalorder %s747_s7, %s747_s7 }
  0xe2   : > { %p2930_p4 = scmp.ne.s32.totalorder %s747_s7, %s2929_s26  ;;  %p2938_p9 = scmp.lt.s32.totalorder %s2929_s26, %s2929_s26 }
  0xe4   : > { %p2932_p1 = pnand %p2930_p4, %p3905_p8  ;;  %p2939_p11 = por %p2938_p9, %p2937_p5 }
  0xe6   : > { %p2933_p12 = pneg %p2932_p1 }
  0xe8   : > { %p2940_p13 = pnand %p2939_p11, %p2933_p12 }
  0xea   : > { %2943 = shalt.err (!%p2940_p13)
}
  0xeb   : > { %2631 = dma.hbm_to_vmem [thread:$0]  (!%p3910_p0), %s3912_s16, 32, %s747_s7, [#allocation10]  }
  0xec   : > { %s839_s22 = scalar_lea.vmem [#allocation14], %s3296_s27  ;;  %s2944_s6 = scalar_lea.hbm %s3446_s30, 16 }
  0xed   : > { %s846_s25 = sshll.u32 %s839_s22, 4  ;;  %p2945_p8 = scmp.ne.s32.totalorder %s3446_s30, %s2944_s6  ;;  %s847_s25 = int_to_ptr.vmem [resolvable:$true] %s846_s25 }
  0xee   : > { %p3913_p6 = scmp.ne.s32.totalorder %s3899_s10, 0  ;;  %s2949_s28 = scalar_lea.hbm %s3911_s11, 32 }
  0xef   : > { %p2950_p3 = scmp.lt.u32.totalorder %s3446_s30, %s3911_s11  ;;  %p2951_p7 = scmp.lt.u32.totalorder %s2949_s28, %s2944_s6 }
  0xf0   : > { %p2947_p10 = pnand %p2945_p8, %p3913_p6  ;;  %p2953_p4 = scmp.lt.u32.totalorder %s2944_s6, %s3446_s30 }
  0xf1   : > { %p2952_p2 = por %p2951_p7, %p2950_p3 }
  0xf2   : > { %p2948_p13 = pneg %p2947_p10 }
  0xf3   : > { %p2954_p0 = por %p2953_p4, %p2952_p2 }
  0xf5   : > { %p2955_p1 = pnand %p2954_p0, %p2948_p13 }
  0xf7   : > { %2958 = shalt.err (!%p2955_p1)
}
  0xf8   : > { %s2959_s27 = scalar_lea.vmem %s847_s25, 16  ;;  %s3061_s7 = smov [#allocation14]  }
  0xf9   : > { %p2960_p12 = scmp.ne.s32.totalorder %s847_s25, %s2959_s27  ;;  %s2964_s19 = sshll.u32 %s3061_s7, 4  ;;  %s2965_s19 = int_to_ptr.vmem [resolvable:$false] %s2964_s19 }
  0xfa   : > { %s2966_s23 = scalar_lea.vmem %s2965_s19, 32  ;;  %p2967_p11 = scmp.lt.s32.totalorder %s847_s25, %s2965_s19 }
  0xfb   : > { %p2962_p5 = pnand %p2960_p12, %p3913_p6  ;;  %p2968_p8 = scmp.lt.s32.totalorder %s2966_s23, %s2959_s27 }
  0xfd   : > { %p2963_p9 = pneg %p2962_p5  ;;  %p2969_p10 = por %p2968_p8, %p2967_p11 }
  0xff   : > { %p2970_p3 = pnand %p2969_p10, %p2963_p9 }
 0x101   : > { %2973 = shalt.err (!%p2970_p3)
}
 0x102   : > { %p3914_p7 = scmp.ne.s32.totalorder %s3896_s0, 0  ;;  %p3915_p13 = scmp.ne.s32.totalorder %s3886_s29, 0 }
 0x103   : > { %p3916_p6 = scmp.eq.s32.totalorder (!%p3915_p13), %s3226_s8, 0 }
 0x104   : > { %2644 = dma.hbm_to_vmem [thread:$0]  (!%p3914_p7), %s3446_s30, 16, %s847_s25, %s3326_s20  }
 0x105   : > { %923 = sbr.rel (%p3915_p13) target bundleno = 3566 (0xdee), region = 124 }
 0x10c   : > { %3017 = dma.done.wait (%p3916_p6), [#allocation4], 32   ;;  %p3917_p2 = pmov %p3916_p6 }
 0x10e   : > { %3019 = vsyncadd (%p3917_p2), [#allocation4], 4294967264  ;;  %p3918_p4 = pmov %p3917_p2 }
 0x10f   : > { %p3919_p0 = pmov %p3917_p2 }
 0x110   : > { %3021 = dma.done.wait (%p3918_p4), [#allocation7], 272  }
 0x111   : > { %3023 = vsyncadd (%p3919_p0), [#allocation7], 4294967024  ;;  %p3920_p1 = pmov %p3919_p0 }
 0x112   : > { %p3921_p12 = pmov %p3919_p0 }
 0x113   : > { %3025 = dma.done.wait (%p3920_p1), [#allocation10], 32  }
 0x114   : > { %3027 = vsyncadd (%p3921_p12), [#allocation10], 4294967264  ;;  %s941_s20 = sand.u32 1, %s3226_s8   ;;  %s3501_s29 = sand.u32 1, %s3042_s3  }
 0x115   : > { %s942_s0 = scalar_lea.sflag [#allocation4], %s941_s20  ;;  %p3922_p5 = scmp.ne.s32.totalorder %s3885_s4, 0 }
 0x117   : > { %3029 = dma.done.wait (%p3922_p5), %s942_s0, 64  }
 0x118   : > { %3031 = vsyncadd (%p3922_p5), %s942_s0, 4294967232  ;;  %p1091_p9 = scmp.lt.s32.totalorder %s3226_s8, 1  ;;  %s3923_s5 = sld [smem:[#allocation32_spill]] }
 0x119   : > { %s3924_s17 = sld [smem:[#allocation34_spill]]  ;;  %s3925_s12 = sld [smem:[#allocation36_spill]] }
 0x11a   : > { %s3510_s30 = scalar_select %p1091_p9, %s3226_s8, 1 }
 0x11b   : > { %s3926_s19 = sld [smem:[#allocation37_spill]]  ;;  %s3930_s11 = sld [smem:[#allocation41_spill]] }
 0x11c   : > { %s2447_s15 = sshll.u32 %s3510_s30, 4  ;;  %s2452_s21 = sshll.u32 %s3510_s30, 5 }
 0x11d   : > { %s3932_s18 = sld [smem:[#allocation43_spill]]  ;;  %s952_s4 = scalar_lea.vmem [#allocation12], %s3501_s29 }
 0x11e   : > { %s3520_s22 = scalar_lea.vmem %s3923_s5, %s2447_s15  ;;  %s3928_s5 = sld [smem:[#allocation39_spill]] }
 0x11f   : > { %s3525_s2 = scalar_lea.vmem %s3924_s17, %s2447_s15  ;;  %s3530_s1 = scalar_lea.vmem %s3925_s12, %s2447_s15 }
 0x120   : > { %s960_s17 = scalar_lea.vmem [#allocation13], %s3501_s29  ;;  %s968_s10 = scalar_lea.vmem [#allocation14], %s3501_s29 }
 0x121   : > { %s3535_s23 = scalar_lea.vmem %s3926_s19, %s2447_s15  ;;  %s3552_s12 = scalar_lea.vmem %s3930_s11, %s2447_s15 }
 0x122   : > { %s3931_s19 = sld [smem:[#allocation42_spill]]  ;;  %p3934_p11 = scmp.ne.s32.totalorder %s3226_s8, 0 }
 0x123   : > { %s3562_s24 = scalar_lea.vmem %s3932_s18, %s2452_s21  ;;  %v1146_v0 = vld [vmem:[#allocation3] sm:$0x3] (!%p3934_p11)  ;;  %vm1159_vm0 = vcmask (!%p3934_p11), 1041408   ;;  %s3935_s28 = sld [smem:[#allocation24_spill]] (!%p3934_p11)  ;;  %v3062_v2 = vmov (!%p3934_p11), 0.0   ;;  %vm3063_vm1 = vmmov (!%p3934_p11), 0  }
 0x124   : > { %s1119_s25 = scalar_lea.vmem %s3928_s5, %s3510_s30  ;;  %s3933_s5 = sld [smem:[#allocation44_spill]]  ;;  %2491 = vmatprep.subr.bf16.mxu0 (!%p3934_p11), %v3062_v2  ;;  %v1161_v3 = vsel (!%p3934_p11), %vm1159_vm0, %v1146_v0, 0  ;;  %2493 = vmatprep.mubr.msk.bf16.mxu0 (!%p3934_p11), %vm3063_vm1, %v3062_v2  ;;  %vm1155_vm2 = vcmask (!%p3934_p11), 31744   ;;  %v2397_v6 = vld [vmem:[#allocation6] ss:$0 sm:$0xff] (!%p3934_p11)  ;;  %vm1204_vm3 = vcmask (!%p3934_p11), 261120  }
 0x125   : > { %1143 = sbr.rel (%p3934_p11) target bundleno = 518 (0x206), region = 160  ;;  %2492 = vmatpush3.bf16.msra.mxu0 (!%p3934_p11), %v1161_v3 }
 0x128   : > { %s1130_s16 = scalar_lea.vmem %s3931_s19, %s3510_s30 }
 0x129   : > { %s3936_s9 = smov (!%p3934_p11), %s3935_s28  ;;  %v1144_v1 = vld [vmem:[%s3935_s28] sm:$0xff] (!%p3934_p11) }
 0x12a   : > { %s1138_s6 = scalar_lea.vmem %s3933_s5, %s3510_s30  ;;  %v1145_v4 = vld [vmem:[%s3936_s9 + $0x8] sm:$0xff] (!%p3934_p11) }
 0x12b   : > { %v1147_v5 = vpack.c.bf16 (!%p3934_p11), %v1145_v4, %v1144_v1 }
 0x12d   : > { %2494 = vmatmul.mubr.msk.bf16.vlgmr.msra.gmra.mrb[0].mxu0 %vm1155_vm2, %v1147_v5 }
 0x200   : > { %v1197_v7 = vpop.f32.mrb[0].mxu0 }
 0x201   : > { %v1198_v8 = vadd.f32 %v2397_v6, %v1197_v7  ;;  %v2495_v9 = vpop.f32.mrb[1].mxu0 }
 0x202   : > { %v1200_v10 = vpop.f32.mrb[2].mxu0 }
 0x203   : > { %1205 = vst.msk [vmem:[#allocation2] sm:$0xff] %vm1204_vm3, %v1198_v8  ;;  %v1201_v11 = vadd.f32 %v2397_v6, %v1200_v10  ;;  %v2496_v12 = vpop.f32.mrb[3].mxu0 }
 0x205   : > { %1206 = vst.msk [vmem:[#allocation2 + $0x8] sm:$0xff] %vm1204_vm3, %v1201_v11 }
 0x206 PF: > { %vm1219_vm4 = vcmask 261120   ;;  %v2704_v27 = vld [vmem:[%s3520_s22] sm:$0xff]   ;;  %v3064_v29 = vmov 0.0   ;;  %v2706_v30 = vld [vmem:[%s3520_s22 + $0x8] sm:$0xff]   ;;  %vm3065_vm5 = vmmov 0   ;;  %s3066_s19 = smov 32   ;;  %s3939_s14 = scalar_lea.vmem %s3812_s13, %s3510_s30 }
 0x207   : > { %v2705_v28 = vld [vmem:[%s3525_s2] sm:$0xff]   ;;  %2497 = vmatprep.subr.bf16.mxu0 %v3064_v29  ;;  %2505 = vmatprep.subr.bf16.mxu1 %v3064_v29  ;;  %v2707_v31 = vld [vmem:[%s3525_s2 + $0x8] sm:$0xff]   ;;  %s3937_s2 = sld [smem:[#allocation27_spill]]  ;;  %s3938_s18 = scalar_lea.vmem [#allocation11], %s3501_s29  ;;  %vm1552_vm6 = vcmask 523264  }
 0x208   : > { %2498 = vmatpush3.bf16.msra.mxu0 %v2704_v27  ;;  %2506 = vmatpush3.bf16.msra.mxu1 %v2705_v28  ;;  %v2399_v42 = vld [vmem:[%s3938_s18] ss:$0 sm:$0xff]  ;;  %v2709_v52 = vld [vmem:[%s3530_s1 + $0x8] sm:$0xff]   ;;  %s3940_s15 = sld [smem:[#allocation38_spill]]  ;;  %p2435_p8 = scmp.ne.s32.totalorder %s3226_s8, 1 }
 0x209   : > { %2499 = vmatprep.subr.bf16.mxu0 %v3064_v29  ;;  %2507 = vmatprep.subr.bf16.mxu1 %v3064_v29  ;;  %v2400_v46 = vld [vmem:[%s952_s4] ss:$0 sm:$0xff]  ;;  %vm3069_vm7 = vmmov (!%p2435_p8), 0   ;;  %vm1927_vm8 = vcmask (!%p2435_p8), 130048   ;;  %vm2003_vm9 = vcmask (!%p2435_p8), 254976   ;;  %s3948_s4 = sld [smem:[#allocation45_spill]] (!%p2435_p8) }
 0x20a   : > { %v3579_v13 = vld [vmem:[#allocation2] sm:$0xff]  ;;  %2501 = vmatprep.mubr.msk.bf16.mxu0 %vm3065_vm5, %v3064_v29  ;;  %2509 = vmatprep.mubr.msk.bf16.mxu1 %vm3065_vm5, %v3064_v29  ;;  %s3949_s11 = sld [smem:[#allocation46_spill]] (!%p2435_p8) }
 0x20b   : > { %v1220_v15 = vsel %vm1219_vm4, %v3579_v13, 0.0  ;;  %v2708_v50 = vld [vmem:[%s3530_s1] sm:$0xff]  }
 0x20c   : > { %v3581_v14 = vld [vmem:[#allocation2 + $0x8] sm:$0xff]  ;;  %1221 = vadd.xlane.f32.xlu0 %v1220_v15  ;;  %2500 = vmatpush3.bf16.msra.mxu0 %v2706_v30  ;;  %v2401_v53 = vld [vmem:[%s960_s17] ss:$0 sm:$0xff]  ;;  %s3067_s17 = smov 96  }
 0x20d   : > { %v1223_v16 = vsel %vm1219_vm4, %v3581_v14, 0.0  ;;  %2508 = vmatpush3.bf16.msra.mxu1 %v2707_v31  ;;  %2513 = vmatprep.subr.bf16.mxu0 %v3064_v29  ;;  %v3608_v32 = vld [vmem:[%s3937_s2 + $0x8] sm:$0xff]   ;;  %v3615_v33 = vld [vmem:[%s3937_s2 + $0x10] sm:$0xff]   ;;  %v2405_v55 = vld [vmem:[%s968_s10] ss:$0 sm:$0xff] }
 0x20e   : > { %2521 = vmatprep.subr.bf16.mxu1 %v3064_v29  ;;  %v2712_v3 = vld [vmem:[%s3937_s2] sm:$0xff]   ;;  %s3941_s28 = scalar_lea.vmem %s3940_s15, %s3510_s30 }
 0x20f   : > { %v2409_v7 = vld [vmem:[%s3939_s14] ss:$0 sm:$0xff] }
 0x210   : > { %1224 = vadd.xlane.f32.xlu0 %v1223_v16  ;;  %v1495_v27 = vld [vmem:[#allocation8 + $0x8] sm:$0xff] }
 0x299   : > { %v1222_v17 = vpop.xlane.xlu0 %1221 }
 0x29a   : > { %v1227_v18 = vmul.f32 0.03125, %v1222_v17 }
 0x29c   : > { %v1229_v19 = vsub.f32 %v3579_v13, %v1227_v18 }
 0x29d   : > { %v1225_v20 = vpop.xlane.xlu0 %1224 }
 0x29e   : > { %v1228_v21 = vmul.f32 0.03125, %v1225_v20  ;;  %v1231_v22 = vmul.f32 %v1229_v19, %v1229_v19 }
 0x2a0   : > { %v1230_v23 = vsub.f32 %v3581_v14, %v1228_v21  ;;  %v1233_v24 = vsel %vm1219_vm4, %v1231_v22, 0.0  ;;  %v2713_v22 = vld [vmem:[%s3937_s2 + $0x18] sm:$0xff]  }
 0x2a1   : > { %1234 = vadd.xlane.f32.xlu1 %v1233_v24 }
 0x2a2   : > { %v1232_v25 = vmul.f32 %v1230_v23, %v1230_v23 }
 0x2a4   : > { %v1236_v26 = vsel %vm1219_vm4, %v1232_v25, 0.0  ;;  %v1494_v25 = vld [vmem:[#allocation8] sm:$0xff] }
 0x2a5   : > { %1237 = vadd.xlane.f32.xlu1 %v1236_v26 }
 0x2b6   : > { %1567 = vrot.lane.b32.xlu1 %v3608_v32, %s3066_s19 }
 0x2ba   : > { %1569 = vrot.lane.b32.xlu1 %v3615_v33, %s3066_s19 }
 0x32e   : > { %v1235_v34 = vpop.xlane.xlu1 %1234 }
 0x32f   : > { %v1239_v35 = vmul.f32 0.03125, %v1235_v34 }
 0x331   : > { %v1241_v36 = vadd.f32 1e-05, %v1239_v35 }
 0x332   : > { %v1238_v37 = vpop.xlane.xlu1 %1237 }
 0x333   : > { %2722 = vrsqrt.f32 %v1241_v36  ;;  %v1240_v38 = vmul.f32 0.03125, %v1238_v37 }
 0x335   : > { %v1242_v39 = vadd.f32 1e-05, %v1240_v38 }
 0x336   : > { %v1568_v38 = vpop.permute.xlu1 %1567 }
 0x337   : > { %2724 = vrsqrt.f32 %v1242_v39 }
 0x33a   : > { %v1570_v39 = vpop.permute.xlu1 %1569 }
 0x33d   : > { %v2723_v40 = vpop.eup %2722 }
 0x33e   : > { %v1245_v41 = vmul.f32 %v2723_v40, %v1229_v19 }
 0x340   : > { %v1253_v45 = vmul.f32 %v2399_v42, %v1245_v41 }
 0x341   : > { %v2725_v43 = vpop.eup %2724 }
 0x342   : > { %v1246_v44 = vmul.f32 %v2725_v43, %v1230_v23  ;;  %v1261_v48 = vadd.f32 %v2400_v46, %v1253_v45 }
 0x344   : > { %v1254_v47 = vmul.f32 %v2399_v42, %v1246_v44 }
 0x346   : > { %v1262_v49 = vadd.f32 %v2400_v46, %v1254_v47 }
 0x348   : > { %v1263_v51 = vpack.c.bf16 %v1262_v49, %v1261_v48 }
 0x34a   : > { %2502 = vmatmul.mubr.msk.bf16.vlgmr.msra.gmra.mrb[0].mxu0 %vm1219_vm4, %v1263_v51  ;;  %2510 = vmatmul.mubr.msk.bf16.vlgmr.msra.gmra.mrb[0].mxu1 %vm1219_vm4, %v1263_v51 }
 0x34b   : > { %2514 = vmatpush3.bf16.msra.mxu0 %v2708_v50  ;;  %2517 = vmatprep.mubr.msk.bf16.mxu0 %vm3065_vm5, %v3064_v29 }
 0x34c   : > { %2515 = vmatprep.subr.bf16.mxu0 %v3064_v29  ;;  %2529 = vmatprep.mubr.msk.bf16.mxu1 %vm3065_vm5, %v3064_v29 }
 0x34f   : > { %2516 = vmatpush3.bf16.msra.mxu0 %v2709_v52 }
 0x350   : > { %2533 = vmatprep.subr.bf16.mxu0 %v3064_v29 }
 0x352   : > { %2518 = vmatmul.mubr.msk.bf16.vlgmr.msra.gmra.mrb[4].mxu0 %vm1219_vm4, %v1263_v51 }
 0x353   : > { %2541 = vmatprep.mubr.msk.bf16.mxu0 %vm3065_vm5, %v3064_v29 }
 0x41d   : > { %v1324_v54 = vpop.f32.mrb[0].mxu0  ;;  %v1389_v56 = vpop.f32.mrb[0].mxu1 }
 0x41e   : > { %v2503_v57 = vpop.f32.mrb[1].mxu0  ;;  %v2511_v58 = vpop.f32.mrb[1].mxu1  ;;  %v1325_v61 = vadd.f32 %v2401_v53, %v1324_v54  ;;  %v1390_v62 = vadd.f32 %v2405_v55, %v1389_v56 }
 0x41f   : > { %v1327_v59 = vpop.f32.mrb[2].mxu0  ;;  %v1392_v60 = vpop.f32.mrb[2].mxu1 }
 0x420   : > { %v1328_v63 = vadd.f32 %v2401_v53, %v1327_v59  ;;  %v1393_v0 = vadd.f32 %v2405_v55, %v1392_v60  ;;  %v2504_v1 = vpop.f32.mrb[3].mxu0  ;;  %v2512_v2 = vpop.f32.mrb[3].mxu1  ;;  %v2715_v60 = vld [vmem:[%s3535_s23 + $0x8] sm:$0xff]  }
 0x422   : > { %v1331_v4 = vpack.c.bf16 %v1328_v63, %v1325_v61  ;;  %v1396_v5 = vpack.c.bf16 %v1393_v0, %v1390_v62 }
 0x424   : > { %v1486_v6 = vmul.bf16 %v2712_v3, %v1396_v5  ;;  %v1487_v18 = vmul.bf16 %v3608_v32, %v1396_v5  ;;  %v1488_v20 = vmul.bf16 %v3615_v33, %v1396_v5  ;;  %v1489_v23 = vmul.bf16 %v2713_v22, %v1396_v5 }
 0x425   : > { %v1454_v8 = vpop.f32.mrb[4].mxu0 }
 0x426   : > { %v2519_v9 = vpop.f32.mrb[5].mxu0  ;;  %v1500_v10 = vsel %vm1219_vm4, %v1486_v6, 0  ;;  %v1455_v12 = vadd.f32 %v2409_v7, %v1454_v8  ;;  %v1503_v19 = vsel %vm1219_vm4, %v1487_v18, 0  ;;  %v1506_v21 = vsel %vm1219_vm4, %v1488_v20, 0 }
 0x427   : > { %v1457_v11 = vpop.f32.mrb[6].mxu0  ;;  %2522 = vmatpush3.bf16.xpose.msra.mxu1 %v1500_v10  ;;  %v1509_v24 = vsel %vm1219_vm4, %v1489_v23, 0 }
 0x428   : > { %v1458_v15 = vadd.f32 %v2409_v7, %v1457_v11  ;;  %v2520_v16 = vpop.f32.mrb[7].mxu0  ;;  %2523 = vmatprep.subr.bf16.mxu1 %v3064_v29  ;;  %v2422_v7 = vld [vmem:[%s3941_s28] ss:$0 sm:$0xff] }
 0x42a   : > { %v1461_v17 = vpack.c.bf16 %v1458_v15, %v1455_v12 }
 0x42c   : > { %v1490_v45 = vmul.bf16 %v2712_v3, %v1461_v17  ;;  %v1491_v47 = vmul.bf16 %v3608_v32, %v1461_v17  ;;  %v1492_v51 = vmul.bf16 %v3615_v33, %v1461_v17  ;;  %v1493_v32 = vmul.bf16 %v2713_v22, %v1461_v17  ;;  %v2714_v33 = vld [vmem:[%s3535_s23] sm:$0xff]  }
 0x42e   : > { %v1579_v50 = vsel %vm1219_vm4, %v1491_v47, %v1568_v38  ;;  %v1583_v52 = vsel %vm1219_vm4, %v1492_v51, %v1570_v39  ;;  %v2720_v51 = vld [vmem:[%s3562_s24 + $0x10] sm:$0xff]  }
 0x42f   : > { %2524 = vmatpush3.bf16.xpose.msra.mxu1 %v1503_v19 }
 0x430   : > { %2525 = vmatprep.subr.bf16.mxu1 %v3064_v29 }
 0x437   : > { %2526 = vmatpush3.bf16.xpose.msra.mxu1 %v1506_v21 }
 0x438   : > { %2527 = vmatprep.subr.bf16.mxu1 %v3064_v29 }
 0x43f   : > { %2528 = vmatpush3.bf16.xpose.msra.mxu1 %v1509_v24 }
 0x440   : > { %2561 = vmatprep.subr.bf16.mxu1 %v3064_v29 }
 0x446   : > { %2530 = vmatmul.mubr.msk.bf16.vlgmr.msra.gmra.mrb[4].mxu1 %vm1219_vm4, %v1331_v4 }
 0x447   : > { %2569 = vmatprep.mubr.msk.bf16.mxu1 %vm3065_vm5, %v3064_v29 }
 0x519   : > { %v1545_v26 = vpop.f32.mrb[4].mxu1 }
 0x51a   : > { %v1546_v28 = vadd.f32 %v1545_v26, %v1494_v25  ;;  %v2531_v30 = vpop.f32.mrb[5].mxu1 }
 0x51b   : > { %v1548_v31 = vpop.f32.mrb[6].mxu1  ;;  %v2718_v30 = vld [vmem:[%s3562_s24] sm:$0xff]  }
 0x51c   : > { %v1549_v34 = vadd.f32 %v1548_v31, %v1495_v27  ;;  %v2532_v35 = vpop.f32.mrb[7].mxu1  ;;  %v1553_v36 = vsel %vm1552_vm6, %v1546_v28, -inf  ;;  %v2716_v27 = vld [vmem:[%s3552_s12] sm:$0xff]   ;;  %2562 = vmatpush3.bf16.msra.mxu1 %v2718_v30  ;;  %v2719_v31 = vld [vmem:[%s3562_s24 + $0x8] sm:$0xff]  }
 0x51d   : > { %1554 = vmax.xlane.f32.xlu0 %v1553_v36  ;;  %2563 = vmatprep.subr.bf16.mxu1 %v3064_v29 }
 0x51e   : > { %v1556_v37 = vsel %vm1552_vm6, %v1549_v34, -inf }
 0x51f   : > { %1557 = vmax.xlane.f32.xlu1 %v1556_v37 }
 0x520   : > { %2564 = vmatpush3.bf16.msra.mxu1 %v2719_v31 }
 0x521   : > { %2565 = vmatprep.subr.bf16.mxu1 %v3064_v29 }
 0x524   : > { %2566 = vmatpush3.bf16.msra.mxu1 %v2720_v51 }
 0x525   : > { %2567 = vmatprep.subr.bf16.mxu1 %v3064_v29 }
 0x530   : > { %1571 = vrot.lane.b32.xlu1 %v2713_v22, %s3066_s19 }
 0x533   : > { %1565 = vrot.lane.b32.xlu0 %v2712_v3, %s3066_s19  ;;  %s3943_s19 = sld [smem:[#allocation40_spill]] }
 0x539   : > { %s3944_s20 = scalar_lea.vmem %s3943_s19, %s3510_s30 }
 0x5aa   : > { %v1555_v40 = vpop.xlane.xlu0 %1554 }
 0x5ab   : > { %v1559_v41 = vsub.f32 %v1546_v28, %v1555_v40  ;;  %v2717_v28 = vld [vmem:[%s3552_s12 + $0x8] sm:$0xff]   ;;  %s3950_s12 = sld [smem:[#allocation48_spill]] (!%p2435_p8) }
 0x5ac   : > { %v1558_v42 = vpop.xlane.xlu1 %1557 }
 0x5ad   : > { %v1561_v43 = vmul.f32 1.442695, %v1559_v41  ;;  %v1560_v44 = vsub.f32 %v1549_v34, %v1558_v42  ;;  %v2423_v42 = vld [vmem:[%s1119_s25] ss:$0 sm:$0xff] }
 0x5ae   : > { %v1566_v46 = vpop.permute.xlu0 %1565 }
 0x5af   : > { %v1563_v48 = vmul.f32 1.442695, %v1560_v44  ;;  %v1575_v49 = vsel %vm1219_vm4, %v1490_v45, %v1566_v46  ;;  %2726 = vpow2.f32 %v1561_v43  ;;  %v2424_v46 = vld [vmem:[%s3944_s20] ss:$0 sm:$0xff] }
 0x5b0   : > { %2534 = vmatpush3.bf16.msra.mxu0 %v1575_v49  ;;  %v1572_v53 = vpop.permute.xlu1 %1571 }
 0x5b1   : > { %2728 = vpow2.f32 %v1563_v48  ;;  %2535 = vmatprep.subr.bf16.mxu0 %v3064_v29  ;;  %v1587_v56 = vsel %vm1219_vm4, %v1493_v32, %v1572_v53  ;;  %v2425_v53 = vld [vmem:[%s1130_s16] ss:$0 sm:$0xff] }
 0x5b2   : > { %v2439_v30 = vld [vmem:[%s3950_s12] ss:$0 sm:$0xff] (!%p2435_p8) }
 0x5b4   : > { %2536 = vmatpush3.bf16.msra.mxu0 %v1579_v50 }
 0x5b5   : > { %2537 = vmatprep.subr.bf16.mxu0 %v3064_v29 }
 0x5b8   : > { %2538 = vmatpush3.bf16.msra.mxu0 %v1583_v52  ;;  %v2721_v52 = vld [vmem:[%s3562_s24 + $0x18] sm:$0xff]  }
 0x5b9   : > { %2539 = vmatprep.subr.bf16.mxu0 %v3064_v29  ;;  %v2727_v54 = vpop.eup %2726  ;;  %2568 = vmatpush3.bf16.msra.mxu1 %v2721_v52 }
 0x5bb   : > { %v2729_v55 = vpop.eup %2728 }
 0x5bc   : > { %2540 = vmatpush3.bf16.msra.mxu0 %v1587_v56  ;;  %v1589_v57 = vpack.c.bf16 %v2729_v55, %v2727_v54 }
 0x5bd   : > { %2545 = vmatprep.subr.bf16.mxu0 %v3064_v29 }
 0x5bf   : > { %2542 = vmatmul.mubr.msk.bf16.vlgmr.msra.gmra.mrb[8].mxu0 %vm1552_vm6, %v1589_v57 }
 0x5c0   : > { %2549 = vmatprep.mubr.msk.bf16.mxu0 %vm3065_vm5, %v3064_v29  ;;  %2546 = vmatpush3.bf16.msra.mxu0 %v2714_v33 }
 0x5c1   : > { %2547 = vmatprep.subr.bf16.mxu0 %v3064_v29 }
 0x5c4   : > { %2548 = vmatpush3.bf16.msra.mxu0 %v2715_v60 }
 0x5c5   : > { %2553 = vmatprep.subr.bf16.mxu0 %v3064_v29 }
 0x692   : > { %v1627_v58 = vpop.f32.mrb[8].mxu0 }
 0x693   : > { %2730 = vrcp.f32 %v1627_v58  ;;  %v2543_v59 = vpop.f32.mrb[9].mxu0 }
 0x694   : > { %v1630_v61 = vpop.f32.mrb[10].mxu0 }
 0x695   : > { %2732 = vrcp.f32 %v1630_v61  ;;  %v2544_v62 = vpop.f32.mrb[11].mxu0 }
 0x69d   : > { %v2731_v63 = vpop.eup %2730 }
 0x69e   : > { %1638 = vrot.lane.b32.xlu0 %v2731_v63, %s3067_s17 }
 0x69f   : > { %v2733_v0 = vpop.eup %2732 }
 0x6a0   : > { %1640 = vrot.lane.b32.xlu1 %v2733_v0, %s3067_s17 }
 0x710   : > { %v1639_v1 = vpop.permute.xlu0 %1638 }
 0x711   : > { %v1644_v3 = vmul.f32 %v1639_v1, %v1627_v58 }
 0x712   : > { %v1641_v2 = vpop.permute.xlu1 %1640 }
 0x713   : > { %v1645_v4 = vmul.f32 %v1641_v2, %v1630_v61 }
 0x715   : > { %v1650_v5 = vpack.c.bf16 %v1645_v4, %v1644_v3 }
 0x717   : > { %2550 = vmatmul.mubr.msk.bf16.vlgmr.msra.gmra.mrb[12].mxu0 %vm1219_vm4, %v1650_v5 }
 0x718   : > { %2557 = vmatprep.mubr.msk.bf16.mxu0 %vm3065_vm5, %v3064_v29  ;;  %2554 = vmatpush3.bf16.msra.mxu0 %v2716_v27 }
 0x719   : > { %2555 = vmatprep.subr.bf16.mxu0 %v3064_v29  ;;  %v2434_v29 = vld [vmem:[%s1138_s6] ss:$0 sm:$0xff]  ;;  %s3947_s6 = sld [smem:[#allocation47_spill]] (!%p2435_p8) }
 0x71c   : > { %2556 = vmatpush3.bf16.msra.mxu0 %v2717_v28 }
 0x7ea   : > { %v1700_v6 = vpop.f32.mrb[12].mxu0 }
 0x7eb   : > { %v1707_v8 = vadd.f32 %v1700_v6, %v3579_v13  ;;  %v2551_v9 = vpop.f32.mrb[13].mxu0  ;;  %v3068_v6 = vmov (!%p2435_p8), 0.0|0.0  }
 0x7ec   : > { %v1703_v10 = vpop.f32.mrb[14].mxu0  ;;  %2588 = vmatprep.subr.bf16.mxu0 (!%p2435_p8), %v3068_v6 }
 0x7ed   : > { %v3694_v11 = vadd.f32 %v2422_v7, %v1707_v8  ;;  %v1708_v12 = vadd.f32 %v1703_v10, %v3581_v14  ;;  %v2552_v15 = vpop.f32.mrb[15].mxu0  ;;  %v1926_v8 = vld [vmem:[#allocation9] sm:$0x3] (!%p2435_p8) }
 0x7ef   : > { %v3697_v16 = vadd.f32 %v2422_v7, %v1708_v12  ;;  %v1720_v17 = vsel %vm1219_vm4, %v3694_v11, 0.0  ;;  %v3070_v7 = vmov (!%p2435_p8), 0.0  }
 0x7f0   : > { %1721 = vadd.xlane.f32.xlu0 %v1720_v17  ;;  %2580 = vmatprep.subr.bf16.mxu1 (!%p2435_p8), %v3070_v7 }
 0x7f1   : > { %v1723_v18 = vsel %vm1219_vm4, %v3697_v16, 0.0 }
 0x7f2   : > { %1724 = vadd.xlane.f32.xlu1 %v1723_v18 }
 0x87d   : > { %v1722_v13 = vpop.xlane.xlu0 %1721 }
 0x87e   : > { %v1726_v19 = vmul.f32 0.03125, %v1722_v13  ;;  %v2738_v13 = vld [vmem:[%s3947_s6] sm:$0xff] (!%p2435_p8)  }
 0x87f   : > { %v1725_v20 = vpop.xlane.xlu1 %1724 }
 0x880   : > { %v1728_v21 = vsub.f32 %v3694_v11, %v1726_v19  ;;  %v1727_v14 = vmul.f32 0.03125, %v1725_v20  ;;  %v2739_v19 = vld [vmem:[%s3947_s6 + $0x8] sm:$0xff] (!%p2435_p8)  }
 0x882   : > { %v1729_v22 = vsub.f32 %v3697_v16, %v1727_v14  ;;  %v1730_v23 = vmul.f32 %v1728_v21, %v1728_v21 }
 0x884   : > { %v1732_v24 = vsel %vm1219_vm4, %v1730_v23, 0.0  ;;  %v1731_v25 = vmul.f32 %v1729_v22, %v1729_v22  ;;  %v2437_v23 = vld [vmem:[%s3948_s4] ss:$0 sm:$0xff] (!%p2435_p8) }
 0x885   : > { %1733 = vadd.xlane.f32.xlu0 %v1732_v24 }
 0x886   : > { %v1735_v26 = vsel %vm1219_vm4, %v1731_v25, 0.0  ;;  %v2438_v25 = vld [vmem:[%s3949_s11] ss:$0 sm:$0xff] (!%p2435_p8) }
 0x889   : > { %1736 = vadd.xlane.f32.xlu0 %v1735_v26 }
 0x912   : > { %v1734_v34 = vpop.xlane.xlu0 %1733 }
 0x913   : > { %v1738_v35 = vmul.f32 0.03125, %v1734_v34 }
 0x915   : > { %v1740_v36 = vadd.f32 1e-05, %v1738_v35 }
 0x916   : > { %v1737_v37 = vpop.xlane.xlu0 %1736 }
 0x917   : > { %2734 = vrsqrt.f32 %v1740_v36  ;;  %v1739_v38 = vmul.f32 0.03125, %v1737_v37 }
 0x919   : > { %v1741_v39 = vadd.f32 1e-05, %v1739_v38 }
 0x91b   : > { %2736 = vrsqrt.f32 %v1741_v39 }
 0x921   : > { %v2735_v40 = vpop.eup %2734 }
 0x922   : > { %v1744_v41 = vmul.f32 %v2735_v40, %v1728_v21 }
 0x924   : > { %v1752_v44 = vmul.f32 %v2423_v42, %v1744_v41 }
 0x925   : > { %v2737_v43 = vpop.eup %2736 }
 0x926   : > { %v1745_v45 = vmul.f32 %v2737_v43, %v1729_v22  ;;  %v1760_v48 = vadd.f32 %v2424_v46, %v1752_v44 }
 0x928   : > { %v1753_v47 = vmul.f32 %v2423_v42, %v1745_v45 }
 0x92a   : > { %v1761_v49 = vadd.f32 %v2424_v46, %v1753_v47 }
 0x92c   : > { %v1766_v50 = vpack.c.bf16 %v1761_v49, %v1760_v48 }
 0x92e   : > { %2558 = vmatmul.mubr.msk.bf16.vlgmr.msra.gmra.mrb[16].mxu0 %vm1219_vm4, %v1766_v50 }
 0x92f   : > { %2577 = vmatprep.mubr.msk.f32.mxu0 (!%p2435_p8), %vm3069_vm7, %v3070_v7 }
 0xa01   : > { %v1823_v32 = vpop.f32.mrb[16].mxu0 }
 0xa02   : > { %v1824_v54 = vadd.f32 %v2425_v53, %v1823_v32  ;;  %v2559_v55 = vpop.f32.mrb[17].mxu0 }
 0xa03   : > { %v1826_v56 = vpop.f32.mrb[18].mxu0 }
 0xa04   : > { %v1827_v57 = vadd.f32 %v2425_v53, %v1826_v56  ;;  %v2560_v33 = vpop.f32.mrb[19].mxu0  ;;  %v1830_v58 = vmax.f32 %v1824_v54, 0.0 }
 0xa06   : > { %v1831_v59 = vmax.f32 %v1827_v57, 0.0 }
 0xa08   : > { %v1840_v60 = vpack.c.bf16 %v1831_v59, %v1830_v58 }
 0xa0a   : > { %2570 = vmatmul.mubr.msk.bf16.vlgmr.msra.gmra.mrb[8].mxu1 %vm1552_vm6, %v1840_v60 }
 0xa0b   : > { %2584 = vmatprep.mubr.msk.bf16.mxu1 (!%p2435_p8), %vm3069_vm7, %v3070_v7  ;;  %2581 = vmatpush3.bf16.msra.mxu1 (!%p2435_p8), %v2738_v13 }
 0xa0c   : > { %2582 = vmatprep.subr.bf16.mxu1 (!%p2435_p8), %v3070_v7 }
 0xa0f   : > { %2583 = vmatpush3.bf16.msra.mxu1 (!%p2435_p8), %v2739_v19 }
 0xadd   : > { %v1902_v61 = vpop.f32.mrb[8].mxu1 }
 0xade   : > { %v1909_v62 = vadd.f32 %v1902_v61, %v3694_v11  ;;  %v2571_v63 = vpop.f32.mrb[9].mxu1  ;;  %1925 = sbr.rel (%p2435_p8) target bundleno = 3535 (0xdcf), region = 164 }
 0xadf   : > { %v1905_v0 = vpop.f32.mrb[10].mxu1 }
 0xae0   : > { %v1918_v1 = vadd.f32 %v2434_v29, %v1909_v62  ;;  %v1910_v2 = vadd.f32 %v1905_v0, %v3697_v16  ;;  %v2572_v3 = vpop.f32.mrb[11].mxu1 }
 0xae2   : > { %1920 = vst.msk [vmem:[#allocation2] sm:$0xff] %vm1219_vm4, %v1918_v1  ;;  %v1919_v4 = vadd.f32 %v2434_v29, %v1910_v2 }
 0xae4   : > { %1921 = vst.msk [vmem:[#allocation2 + $0x8] sm:$0xff] %vm1219_vm4, %v1919_v4  ;;  %v2589_v5 = vpack.c.bf16 (!%p2435_p8), %v1919_v4, %v1918_v1 }
 0xae6   : > { %2590 = vmatpush3.bf16.msra.mxu0 %v2589_v5 }
 0xae9   : > { %2578 = vmatmul.mubr.msk.f32.vlgmr.msra.gmra.mrb[0].mxu0 %vm1927_vm8, %v1926_v8 }
 0xbbc   : > { %v1997_v9 = vpop.f32.mrb[0].mxu0 }
 0xbbd   : > { %v2579_v10 = vpop.f32.mrb[1].mxu0  ;;  %v2004_v11 = vsel %vm2003_vm9, %v1997_v9, 0.0 }
 0xbbe   : > { %2005 = vadd.xlane.f32.xlu0 %v2004_v11 }
 0xc4b   : > { %v2006_v12 = vpop.xlane.xlu0 %2005 }
 0xc4c   : > { %v2007_v15 = vmul.f32 0.03125, %v2006_v12 }
 0xc4e   : > { %v2008_v16 = vsub.f32 %v1997_v9, %v2007_v15 }
 0xc50   : > { %v2009_v17 = vmul.f32 %v2008_v16, %v2008_v16 }
 0xc52   : > { %v2010_v18 = vsel %vm2003_vm9, %v2009_v17, 0.0 }
 0xc53   : > { %2011 = vadd.xlane.f32.xlu0 %v2010_v18 }
 0xce0   : > { %v2012_v20 = vpop.xlane.xlu0 %2011 }
 0xce1   : > { %v2013_v21 = vmul.f32 0.03125, %v2012_v20 }
 0xce3   : > { %v2014_v14 = vadd.f32 1e-05, %v2013_v21 }
 0xce5   : > { %2740 = vrsqrt.f32 %v2014_v14 }
 0xcef   : > { %v2741_v22 = vpop.eup %2740 }
 0xcf0   : > { %v2016_v24 = vmul.f32 %v2741_v22, %v2008_v16 }
 0xcf2   : > { %v2023_v26 = vmul.f32 %v2437_v23, %v2016_v24 }
 0xcf4   : > { %v2030_v27 = vadd.f32 %v2438_v25, %v2023_v26 }
 0xcf6   : > { %v2035_v28 = vpack.c.bf16 %v2030_v27, %v2030_v27 }
 0xcf8   : > { %2585 = vmatmul.mubr.msk.bf16.vlgmr.msra.gmra.mrb[0].mxu1 %vm1219_vm4, %v2035_v28 }
 0xdcb   : > { %v2092_v31 = vpop.f32.mrb[0].mxu1 }
 0xdcc   : > { %v2093_v34 = vadd.f32 %v2439_v30, %v2092_v31  ;;  %v2586_v35 = vpop.f32.mrb[1].mxu1 }
 0xdcd   : > { %v2095_v36 = vpop.f32.mrb[2].mxu1 }
 0xdce   : > { %2098 = vst.msk [vmem:[#allocation15] sm:$0x3] %vm2003_vm9, %v2093_v34  ;;  %v2587_v37 = vpop.f32.mrb[3].mxu1 }
 0xdcf PF: > { %p2654_p10 = scmp.eq.s32.totalorder %s3226_s8, 1  ;;  %s3071_s21 = smov [#allocation15]  }
 0xdd0   : > { %s2106_s27 = sshll.u32 %s3071_s21, 4  ;;  %s2107_s27 = int_to_ptr.vmem [resolvable:$true] %s2106_s27 }
 0xdd1   : > { %s2974_s7 = scalar_lea.vmem %s2107_s27, 32  ;;  %p2981_p6 = scmp.lt.s32.totalorder %s2107_s27, %s2107_s27 }
 0xdd2   : > { %p2975_p3 = scmp.ne.s32.totalorder %s2107_s27, %s2974_s7  ;;  %p2982_p2 = scmp.lt.s32.totalorder %s2974_s7, %s2974_s7 }
 0xdd4   : > { %p2976_p7 = pnand %p2975_p3, %p2654_p10  ;;  %p2983_p4 = por %p2982_p2, %p2981_p6 }
 0xdd6   : > { %p2977_p13 = pneg %p2976_p7 }
 0xdd8   : > { %p2984_p0 = pnand %p2983_p4, %p2977_p13 }
 0xdda   : > { %2987 = shalt.err (!%p2984_p0)
}
 0xddb   : > { %s3951_s20 = sld [smem:[#allocation49_spill]] }
 0xde1   : > { %s2988_s25 = scalar_lea.hbm %s3951_s20, 32 }
 0xde2   : > { %p2989_p1 = scmp.ne.s32.totalorder %s3951_s20, %s2988_s25  ;;  %p2994_p9 = scmp.lt.u32.totalorder %s2988_s25, %s3951_s20 }
 0xde4   : > { %p2990_p12 = pnand %p2989_p1, %p2654_p10 }
 0xde6   : > { %p2991_p5 = pneg %p2990_p12 }
 0xde8   : > { %p2996_p11 = pnand %p2994_p9, %p2991_p5 }
 0xdea   : > { %2999 = shalt.err (!%p2996_p11)
}
 0xdeb   : > { %2616 = dma.vmem_to_hbm [thread:$0]  (%p2654_p10), %s2107_s27, 32, %s3951_s20, [#allocation5]  }
 0xdec   : > { %3033 = dma.done.wait (%p2654_p10), [#allocation5], 32  }
 0xded   : > { %3035 = vsyncadd (%p2654_p10), [#allocation5], 4294967264 }
 0xdee PF: > { %s3952_s28 = sld [smem:[#allocation22_spill]]  ;;  %s3953_s30 = sld [smem:[#allocation21_spill]] }
 0xdef   : > { %s3954_s7 = sld [smem:[#allocation23_spill]]  ;;  %s3955_s27 = smov %s3042_s3 }
 0xdf4   : > { %p37_p8 = scmp.ge.s32.totalorder %s3952_s28, 4   ;;  %s3956_s3 = smov %s3953_s30 }
 0xdf6   :  { %39 = sbr.rel (!%p37_p8) target bundleno = 32 (0x20), region = 253 }
 0xdfd   :  { %2119 = vsyncpa [#allocation4], 1 }
 0xdfe   :  { %2121 = vsyncpa [#allocation4 + $0x1], 1 }
 0xdff   :  { %2122 = vsyncpa [#allocation7], 1 }
 0xe00   :  { %2123 = vsyncpa [#allocation10], 1 }
 0xe01   :  { %2124 = vsyncpa [#allocation5], 1 }
 0xe02   :  { %2126 = vsyncpa [#allocation5 + $0x1], 1 }

</bundles_post_ra>
